<compile_context>
chip_gen: v6e
topology: v6e:2x2x1
jax: 0.10.0
libtpu: 0.0.40
codegen_flags: <defaults>
</compile_context>

<pallas_src>
import numpy as np
import jax
import jax.numpy as jnp
from jax import lax
from jax.experimental import pallas as pl
from jax.experimental.pallas import tpu as pltpu


# -----------------------------------------------------------------------------
# cfg (synthetic, deterministic) -- mirrors the names used by the torch module.
# -----------------------------------------------------------------------------
class cfg:
    train_rpn_pre_nms_top_N = 256
    train_rpn_post_nms_top_N = 64
    test_rpn_post_nms_top_N = 128   # torch code uses this for BOTH pre and post at test time
    rpn_nms_thresh = 0.7


# -----------------------------------------------------------------------------
# Deterministic anchor generation (standard py-faster-rcnn, numpy)
# -----------------------------------------------------------------------------
def _whctrs(anchor):
    w = anchor[2] - anchor[0] + 1
    h = anchor[3] - anchor[1] + 1
    x_ctr = anchor[0] + 0.5 * (w - 1)
    y_ctr = anchor[1] + 0.5 * (h - 1)
    return w, h, x_ctr, y_ctr


def _mkanchors(ws, hs, x_ctr, y_ctr):
    ws = ws[:, np.newaxis]
    hs = hs[:, np.newaxis]
    return np.hstack((x_ctr - 0.5 * (ws - 1), y_ctr - 0.5 * (hs - 1),
                      x_ctr + 0.5 * (ws - 1), y_ctr + 0.5 * (hs - 1)))


def _ratio_enum(anchor, ratios):
    w, h, x_ctr, y_ctr = _whctrs(anchor)
    size = w * h
    size_ratios = size / ratios
    ws = np.round(np.sqrt(size_ratios))
    hs = np.round(ws * ratios)
    return _mkanchors(ws, hs, x_ctr, y_ctr)


def _scale_enum(anchor, scales):
    w, h, x_ctr, y_ctr = _whctrs(anchor)
    ws = w * scales
    hs = h * scales
    return _mkanchors(ws, hs, x_ctr, y_ctr)


def generate_anchors(feature_stride=16, ratios=np.array([0.5, 1, 2]),
                     scales=2 ** np.arange(3, 6)):
    base_anchor = np.array([1, 1, feature_stride, feature_stride], dtype=np.float64) - 1
    ratio_anchors = _ratio_enum(base_anchor, ratios)
    return np.vstack([_scale_enum(ratio_anchors[i, :], scales)
                      for i in range(ratio_anchors.shape[0])])


# -----------------------------------------------------------------------------
# Fused Pallas kernel:
#   top-k features in  -> decode + clip -> pairwise overlap candidate matrices
#   (VMEM scratch only) -> greedy NMS via exact self-suppression fixed point.
# -----------------------------------------------------------------------------
def _make_proposal_nms_kernel(nms_thresh, k_pad, k_real):
    th = float(nms_thresh)

    def kernel(bounds_ref, cm_ref, rm_ref, prop_ref, keep_ref, cmat_ref, fmat_ref):
        b = pl.program_id(0)
        xmax = bounds_ref[b, 0]   # im_width  - 1
        ymax = bounds_ref[b, 1]   # im_height - 1

        # ---- decode + clip, lane-major (1, k) planes: row operands + proposals out.
        # cm_ref rows: dx, dy, dw, dh, aw, ah, acx, acy   (anchor-only terms hoisted).
        dx, dy = cm_ref[0:1, :], cm_ref[1:2, :]
        dw, dh = cm_ref[2:3, :], cm_ref[3:4, :]
        aw, ah = cm_ref[4:5, :], cm_ref[5:6, :]
        acx, acy = cm_ref[6:7, :], cm_ref[7:8, :]
        pcx = dx * aw + acx
        pcy = dy * ah + acy
        pw = jnp.exp(dw) * aw
        ph = jnp.exp(dh) * ah
        x1r = jnp.minimum(jnp.maximum(pcx - 0.5 * pw, 0.0), xmax)
        y1r = jnp.minimum(jnp.maximum(pcy - 0.5 * ph, 0.0), ymax)
        x2r = jnp.minimum(jnp.maximum(pcx + 0.5 * pw, 0.0), xmax)
        y2r = jnp.minimum(jnp.maximum(pcy + 0.5 * ph, 0.0), ymax)
        prop_ref[0:1, :] = x1r
        prop_ref[1:2, :] = y1r
        prop_ref[2:3, :] = x2r
        prop_ref[3:4, :] = y2r
        area_r = (x2r - x1r + 1.0) * (y2r - y1r + 1.0)                      # (1, k)

        # ---- same decode in sublane-major layout for the (k,1) column operands
        # (rm_ref is the transposed feature pack; avoids an in-kernel transpose).
        dxc, dyc = rm_ref[:, 0:1], rm_ref[:, 1:2]
        dwc, dhc = rm_ref[:, 2:3], rm_ref[:, 3:4]
        awc, ahc = rm_ref[:, 4:5], rm_ref[:, 5:6]
        acxc, acyc = rm_ref[:, 6:7], rm_ref[:, 7:8]
        pcxc = dxc * awc + acxc
        pcyc = dyc * ahc + acyc
        pwc = jnp.exp(dwc) * awc
        phc = jnp.exp(dhc) * ahc
        x1c = jnp.minimum(jnp.maximum(pcxc - 0.5 * pwc, 0.0), xmax)
        y1c = jnp.minimum(jnp.maximum(pcyc - 0.5 * phc, 0.0), ymax)
        x2c = jnp.minimum(jnp.maximum(pcxc + 0.5 * pwc, 0.0), xmax)
        y2c = jnp.minimum(jnp.maximum(pcyc + 0.5 * phc, 0.0), ymax)
        area_c = (x2c - x1c + 1.0) * (y2c - y1c + 1.0)                      # (k, 1)

        # ---- pairwise "IoU > thresh" candidate matrices.
        # Division-free and exact:  inter/union > th  <=>  inter > th*union  (union >= 1).
        # Column operands are broadcast to (k,k) ONCE (review item 5).
        K = k_pad
        X1 = jnp.broadcast_to(x1c, (K, K))
        Y1 = jnp.broadcast_to(y1c, (K, K))
        X2 = jnp.broadcast_to(x2c, (K, K))
        Y2 = jnp.broadcast_to(y2c, (K, K))
        AC = jnp.broadcast_to(area_c, (K, K))
        iw = jnp.maximum(jnp.minimum(X2, x2r) - jnp.maximum(X1, x1r) + 1.0, 0.0)
        ih = jnp.maximum(jnp.minimum(Y2, y2r) - jnp.maximum(Y1, y1r) + 1.0, 0.0)
        inter = iw * ih
        union = AC + area_r - inter
        overlap = inter > (th * union)

        row_i = lax.broadcasted_iota(jnp.int32, (K, K), 0)   # sublane index r
        col_i = lax.broadcasted_iota(jnp.int32, (K, K), 1)   # lane index    c
        # cmat[r,c] = 1  iff higher-scored REAL box c (c<r, c<k_real) overlaps box r.
        cmat_ref[...] = jnp.where(overlap & (col_i < row_i) & (col_i < k_real), 1.0, 0.0)
        # fmat[r,c] = 1  iff higher-scored REAL box r (r<c, r<k_real) overlaps box c.
        fmat_ref[...] = jnp.where(overlap & (row_i < col_i) & (row_i < k_real), 1.0, 0.0)

        valid_row = (lax.broadcasted_iota(jnp.int32, (1, K), 1) < k_real
                     ).astype(jnp.float32)                                   # (1, k)
        valid_col = (lax.broadcasted_iota(jnp.int32, (K, 1), 0) < k_real
                     ).astype(jnp.float32)                                   # (k, 1)

        # ---- greedy NMS as a self-suppression fixed point.
        # T(keep)[i] = NOT exists j<i: keep[j] & overlap(i,j).  The greedy solution is
        # the unique fixed point of T and T^k is constant, so iterating T (two passes
        # per while step, alternating row/column orientation to avoid transposes) until
        # the keep vector stops changing yields the exact greedy result.
        def cond_fn(carry):
            return carry[1]

        def body_fn(carry):
            keep_row, _ = carry
            hits_c = jnp.sum(cmat_ref[...] * keep_row, axis=1, keepdims=True)    # (k,1)
            keep_col = jnp.where(hits_c > 0.5, 0.0, 1.0) * valid_col
            hits_r = jnp.sum(fmat_ref[...] * jnp.broadcast_to(keep_col, (K, K)),
                             axis=0, keepdims=True)                              # (1,k)
            keep_new = jnp.where(hits_r > 0.5, 0.0, 1.0) * valid_row
            changed = jnp.sum(jnp.abs(keep_new - keep_row)) > 0.0
            return keep_new, changed

        keep_row, _ = lax.while_loop(cond_fn, body_fn, (valid_row, jnp.array(True)))
        keep_ref[...] = keep_row

    return kernel


def proposal_nms(bounds, feat_cm, feat_rm, nms_thresh, k_real):
    """bounds (B,2)=[w-1,h-1], feat_cm (B,8,k_pad), feat_rm (B,k_pad,8)
       -> proposals (B,4,k_pad), keep mask (B,k_pad) in {0.,1.} (exact greedy NMS)."""
    B, _, k_pad = feat_cm.shape
    kernel = _make_proposal_nms_kernel(float(nms_thresh), int(k_pad), int(k_real))
    prop_cm, keep = pl.pallas_call(
        kernel,
        out_shape=(jax.ShapeDtypeStruct((B, 4, k_pad), jnp.float32),
                   jax.ShapeDtypeStruct((B, 1, k_pad), jnp.float32)),
        grid=(B,),
        in_specs=[
            pl.BlockSpec(memory_space=pltpu.MemorySpace.SMEM),           # bounds (B,2)
            pl.BlockSpec((None, 8, k_pad), lambda b: (b, 0, 0)),         # features, lane-major
            pl.BlockSpec((None, k_pad, 8), lambda b: (b, 0, 0)),         # features, sublane-major
        ],
        out_specs=(
            pl.BlockSpec((None, 4, k_pad), lambda b: (b, 0, 0)),
            pl.BlockSpec((None, 1, k_pad), lambda b: (b, 0, 0)),
        ),
        # TODO(synk): for configs with pre_nms_topN in the thousands, build the (k,k)
        # candidate matrices in row strips instead of one scratch to stay under VMEM.
        scratch_shapes=[pltpu.VMEM((k_pad, k_pad), jnp.float32),
                        pltpu.VMEM((k_pad, k_pad), jnp.float32)],
        compiler_params=pltpu.CompilerParams(dimension_semantics=("parallel",)),
    )(bounds, feat_cm, feat_rm)
    return prop_cm, keep.reshape(B, k_pad)


# -----------------------------------------------------------------------------
# The proposal layer
# -----------------------------------------------------------------------------
class ProposalLayerPallas:
    def __init__(self, feature_stride, scales, ratios):
        self._feat_stride = feature_stride
        self._anchors_np = generate_anchors(
            feature_stride=16, scales=np.array(scales),
            ratios=np.array(ratios)).astype(np.float32)
        self._num_anchors = self._anchors_np.shape[0]

    def __call__(self, inputs):
        scores_all, bbox_deltas, im_info, is_training = inputs
        A = self._num_anchors
        scores = scores_all[:, A:, :, :]                    # (B, A, H, W) objectness

        if is_training:
            pre_nms_topN = cfg.train_rpn_pre_nms_top_N
            post_nms_topN = cfg.train_rpn_post_nms_top_N
        else:
            pre_nms_topN = cfg.test_rpn_post_nms_top_N
            post_nms_topN = cfg.test_rpn_post_nms_top_N
        nms_thresh = cfg.rpn_nms_thresh

        B = bbox_deltas.shape[0]
        H, W = scores.shape[2], scores.shape[3]

        # shifted anchors + hoisted anchor-only terms (w, h, cx, cy)  (numpy, once)
        shift_x = np.arange(0, W) * self._feat_stride
        shift_y = np.arange(0, H) * self._feat_stride
        sx, sy = np.meshgrid(shift_x, shift_y)
        shifts = np.vstack((sx.ravel(), sy.ravel(), sx.ravel(), sy.ravel())
                           ).transpose().astype(np.float32)                 # (K, 4)
        K = shifts.shape[0]
        anchors = (self._anchors_np.reshape(1, A, 4) +
                   shifts.reshape(K, 1, 4)).reshape(K * A, 4).astype(np.float32)
        N = K * A
        aw = anchors[:, 2] - anchors[:, 0] + 1.0
        ah = anchors[:, 3] - anchors[:, 1] + 1.0
        acx = anchors[:, 0] + 0.5 * aw
        acy = anchors[:, 1] + 0.5 * ah
        anchor_aux = jnp.asarray(np.stack([aw, ah, acx, acy], axis=1))      # (N, 4)

        # single NCHW -> (B, N, ...) layout pass for scores and deltas
        scores_flat = jnp.transpose(scores, (0, 2, 3, 1)).reshape(B, N)
        deltas_flat = jnp.transpose(bbox_deltas, (0, 2, 3, 1)).reshape(B, N, 4)

        # clip bounds per image: [width-1, height-1]   (im_info rows are [h, w, scale])
        bounds = jnp.stack([im_info[:, 1] - 1.0, im_info[:, 0] - 1.0],
                           axis=1).astype(jnp.float32)

        # (torch code prints im_info here; omitted to keep stdout clean)

        # ---- top-k BEFORE decode: only pre_nms_topN boxes are ever decoded ----
        if pre_nms_topN > 0 and pre_nms_topN < B * N:   # same guard as torch (numel)
            k = min(pre_nms_topN, N)
        else:
            k = N
        _, order = jax.lax.top_k(scores_flat, k)                            # (B, k)

        deltas_top = jnp.take_along_axis(deltas_flat, order[:, :, None], axis=1)  # (B,k,4)
        aux_top = anchor_aux[order]                                         # (B,k,4)

        LANES = 128
        k_pad = ((k + LANES - 1) // LANES) * LANES
        feat_rm = jnp.concatenate([deltas_top, aux_top], axis=2)            # (B,k,8)
        if k_pad != k:
            feat_rm = jnp.pad(feat_rm, ((0, 0), (0, k_pad - k), (0, 0)))
        feat_cm = jnp.transpose(feat_rm, (0, 2, 1))                         # (B,8,k_pad)

        # fused decode + clip + IoU + greedy-NMS kernel
        prop_cm, keep = proposal_nms(bounds, feat_cm, feat_rm, nms_thresh, k)

        # kept indices in score order, padded with sentinel k_pad (maps to a zero box);
        # pad lanes already have keep == 0 from the kernel.
        idx = jnp.arange(k_pad, dtype=jnp.int32)
        key = jnp.where(keep > 0.5, idx[None, :], k_pad)
        sorted_key = jnp.sort(key, axis=1)
        if sorted_key.shape[1] < post_nms_topN:
            sorted_key = jnp.pad(sorted_key,
                                 ((0, 0), (0, post_nms_topN - sorted_key.shape[1])),
                                 constant_values=k_pad)
        kept_idx = sorted_key[:, :post_nms_topN]                            # (B, post)

        props_rm = jnp.transpose(prop_cm, (0, 2, 1))                        # (B,k_pad,4)
        props_ext = jnp.concatenate(
            [props_rm, jnp.zeros((B, 1, 4), jnp.float32)], axis=1)          # (B,k_pad+1,4)
        sel = jax.vmap(lambda p, i: p[i])(props_ext, kept_idx)              # (B, post, 4)
        batch_ids = jnp.broadcast_to(
            jnp.arange(B, dtype=jnp.float32)[:, None, None], (B, post_nms_topN, 1))
        output = jnp.concatenate([batch_ids, sel], axis=2)                  # (B, post, 5)
        return output

    def _filter_boxes(self, boxes, min_size):
        # Defined for parity with the torch module; never called in forward (same as torch).
        ws = boxes[:, :, 2] - boxes[:, :, 0] + 1
        hs = boxes[:, :, 3] - boxes[:, :, 1] + 1
        ms = min_size.reshape(-1, 1)
        return (ws >= ms) & (hs >= ms)


# TODO(synk): the global descending score sort (lax.top_k) and the fixed-size kept-index
# compaction (jnp.sort) stay in plain JAX — they have no clean Pallas TPU equivalent;
# decode/clip/IoU/greedy-NMS are fused into the single Pallas kernel above.

if __name__ == "__main__":
    key = jax.random.PRNGKey(0)
    k1, k2 = jax.random.split(key)

    B, H, W = 2, 16, 16
    scales = [8, 16, 32]
    ratios = [0.5, 1, 2]
    A = 9  # len(scales) * len(ratios)

    rpn_cls_score = jax.random.normal(k1, (B, 2 * A, H, W), jnp.float32)
    rpn_bbox_pred = 0.1 * jax.random.normal(k2, (B, 4 * A, H, W), jnp.float32)
    im_info = jnp.array([[H * 16.0, W * 16.0, 1.0]] * B, jnp.float32)  # [h, w, scale]

    layer = ProposalLayerPallas(feature_stride=16, scales=scales, ratios=ratios)
    out = layer((rpn_cls_score, rpn_bbox_pred, im_info, False))
    out = jax.block_until_ready(out)

    assert out.shape == (B, cfg.test_rpn_post_nms_top_N, 5)
    assert bool(jnp.all(jnp.isfinite(out)))
    print("KERNEL_OK")
</pallas_src>

<mosaic_0001>
module attributes {stable_mosaic.version = 11 : i64} {
  func.func @kernel(%arg0: i32, %arg1: memref<2x2xf32, #tpu.memory_space<smem>>, %arg2: memref<1x8x128xf32, #tpu.memory_space<vmem>>, %arg3: memref<1x128x8xf32, #tpu.memory_space<vmem>>, %arg4: memref<1x4x128xf32, #tpu.memory_space<vmem>>, %arg5: memref<1x1x128xf32, #tpu.memory_space<vmem>>, %arg6: memref<128x128xf32, #tpu.memory_space<vmem>>, %arg7: memref<128x128xf32, #tpu.memory_space<vmem>>) attributes {dimension_semantics = [#tpu.dimension_semantics<parallel>], iteration_bounds = array<i64: 2>, scalar_prefetch = 0 : i64, scratch_operands = 2 : i64, tpu.core_type = #tpu.core_type<tc>, window_params = [{transform_indices = @transform_0, window_bounds = array<i64: 2, 2>}, {transform_indices = @transform_1, window_bounds = array<i64: 1, 8, 128>}, {transform_indices = @transform_2, window_bounds = array<i64: 1, 128, 8>}, {transform_indices = @transform_3, window_bounds = array<i64: 1, 4, 128>}, {transform_indices = @transform_4, window_bounds = array<i64: 1, 1, 128>}]} {
    %0 = arith.index_cast %arg0 : i32 to index
    %c0 = arith.constant 0 : index
    %1 = memref.load %arg1[%0, %c0] : memref<2x2xf32, #tpu.memory_space<smem>>
    %2 = arith.index_cast %arg0 : i32 to index
    %c1 = arith.constant 1 : index
    %3 = memref.load %arg1[%2, %c1] : memref<2x2xf32, #tpu.memory_space<smem>>
    %c0_0 = arith.constant 0 : index
    %c0_1 = arith.constant 0 : index
    %c0_2 = arith.constant 0 : index
    %4 = vector.load %arg2[%c0_0, %c0_1, %c0_2] : memref<1x8x128xf32, #tpu.memory_space<vmem>>, vector<1x1x128xf32>
    %5 = vector.shape_cast %4 : vector<1x1x128xf32> to vector<1x128xf32>
    %c0_3 = arith.constant 0 : index
    %c1_4 = arith.constant 1 : index
    %c0_5 = arith.constant 0 : index
    %6 = vector.load %arg2[%c0_3, %c1_4, %c0_5] : memref<1x8x128xf32, #tpu.memory_space<vmem>>, vector<1x1x128xf32>
    %7 = vector.shape_cast %6 : vector<1x1x128xf32> to vector<1x128xf32>
    %c0_6 = arith.constant 0 : index
    %c2 = arith.constant 2 : index
    %c0_7 = arith.constant 0 : index
    %8 = vector.load %arg2[%c0_6, %c2, %c0_7] : memref<1x8x128xf32, #tpu.memory_space<vmem>>, vector<1x1x128xf32>
    %9 = vector.shape_cast %8 : vector<1x1x128xf32> to vector<1x128xf32>
    %c0_8 = arith.constant 0 : index
    %c3 = arith.constant 3 : index
    %c0_9 = arith.constant 0 : index
    %10 = vector.load %arg2[%c0_8, %c3, %c0_9] : memref<1x8x128xf32, #tpu.memory_space<vmem>>, vector<1x1x128xf32>
    %11 = vector.shape_cast %10 : vector<1x1x128xf32> to vector<1x128xf32>
    %c0_10 = arith.constant 0 : index
    %c4 = arith.constant 4 : index
    %c0_11 = arith.constant 0 : index
    %12 = vector.load %arg2[%c0_10, %c4, %c0_11] : memref<1x8x128xf32, #tpu.memory_space<vmem>>, vector<1x1x128xf32>
    %13 = vector.shape_cast %12 : vector<1x1x128xf32> to vector<1x128xf32>
    %c0_12 = arith.constant 0 : index
    %c5 = arith.constant 5 : index
    %c0_13 = arith.constant 0 : index
    %14 = vector.load %arg2[%c0_12, %c5, %c0_13] : memref<1x8x128xf32, #tpu.memory_space<vmem>>, vector<1x1x128xf32>
    %15 = vector.shape_cast %14 : vector<1x1x128xf32> to vector<1x128xf32>
    %c0_14 = arith.constant 0 : index
    %c6 = arith.constant 6 : index
    %c0_15 = arith.constant 0 : index
    %16 = vector.load %arg2[%c0_14, %c6, %c0_15] : memref<1x8x128xf32, #tpu.memory_space<vmem>>, vector<1x1x128xf32>
    %17 = vector.shape_cast %16 : vector<1x1x128xf32> to vector<1x128xf32>
    %c0_16 = arith.constant 0 : index
    %c7 = arith.constant 7 : index
    %c0_17 = arith.constant 0 : index
    %18 = vector.load %arg2[%c0_16, %c7, %c0_17] : memref<1x8x128xf32, #tpu.memory_space<vmem>>, vector<1x1x128xf32>
    %19 = vector.shape_cast %18 : vector<1x1x128xf32> to vector<1x128xf32>
    %20 = arith.mulf %5, %13 : vector<1x128xf32>
    %21 = arith.addf %20, %17 : vector<1x128xf32>
    %22 = arith.mulf %7, %15 : vector<1x128xf32>
    %23 = arith.addf %22, %19 : vector<1x128xf32>
    %24 = math.exp %9 : vector<1x128xf32>
    %25 = arith.mulf %24, %13 : vector<1x128xf32>
    %26 = math.exp %11 : vector<1x128xf32>
    %27 = arith.mulf %26, %15 : vector<1x128xf32>
    %cst = arith.constant 5.000000e-01 : f32
    %28 = vector.broadcast %cst : f32 to vector<1x128xf32>
    %29 = arith.mulf %28, %25 : vector<1x128xf32>
    %30 = arith.subf %21, %29 : vector<1x128xf32>
    %cst_18 = arith.constant 0.000000e+00 : f32
    %31 = vector.broadcast %cst_18 : f32 to vector<1x128xf32>
    %32 = arith.maximumf %30, %31 : vector<1x128xf32>
    %33 = vector.broadcast %1 : f32 to vector<1x128xf32>
    %34 = arith.minimumf %32, %33 : vector<1x128xf32>
    %cst_19 = arith.constant 5.000000e-01 : f32
    %35 = vector.broadcast %cst_19 : f32 to vector<1x128xf32>
    %36 = arith.mulf %35, %27 : vector<1x128xf32>
    %37 = arith.subf %23, %36 : vector<1x128xf32>
    %cst_20 = arith.constant 0.000000e+00 : f32
    %38 = vector.broadcast %cst_20 : f32 to vector<1x128xf32>
    %39 = arith.maximumf %37, %38 : vector<1x128xf32>
    %40 = vector.broadcast %3 : f32 to vector<1x128xf32>
    %41 = arith.minimumf %39, %40 : vector<1x128xf32>
    %cst_21 = arith.constant 5.000000e-01 : f32
    %42 = vector.broadcast %cst_21 : f32 to vector<1x128xf32>
    %43 = arith.mulf %42, %25 : vector<1x128xf32>
    %44 = arith.addf %21, %43 : vector<1x128xf32>
    %cst_22 = arith.constant 0.000000e+00 : f32
    %45 = vector.broadcast %cst_22 : f32 to vector<1x128xf32>
    %46 = arith.maximumf %44, %45 : vector<1x128xf32>
    %47 = vector.broadcast %1 : f32 to vector<1x128xf32>
    %48 = arith.minimumf %46, %47 : vector<1x128xf32>
    %cst_23 = arith.constant 5.000000e-01 : f32
    %49 = vector.broadcast %cst_23 : f32 to vector<1x128xf32>
    %50 = arith.mulf %49, %27 : vector<1x128xf32>
    %51 = arith.addf %23, %50 : vector<1x128xf32>
    %cst_24 = arith.constant 0.000000e+00 : f32
    %52 = vector.broadcast %cst_24 : f32 to vector<1x128xf32>
    %53 = arith.maximumf %51, %52 : vector<1x128xf32>
    %54 = vector.broadcast %3 : f32 to vector<1x128xf32>
    %55 = arith.minimumf %53, %54 : vector<1x128xf32>
    %c0_25 = arith.constant 0 : index
    %c0_26 = arith.constant 0 : index
    %c0_27 = arith.constant 0 : index
    %56 = vector.load %arg4[%c0_25, %c0_26, %c0_27] : memref<1x4x128xf32, #tpu.memory_space<vmem>>, vector<1x1x128xf32>
    %57 = vector.shape_cast %56 : vector<1x1x128xf32> to vector<1x128xf32>
    %58 = vector.shape_cast %34 : vector<1x128xf32> to vector<1x1x128xf32>
    tpu.vector_store %arg4[%c0_25, %c0_26, %c0_27], %58 {strides = array<i32>} : memref<1x4x128xf32, #tpu.memory_space<vmem>>, vector<1x1x128xf32>,
    %c0_28 = arith.constant 0 : index
    %c1_29 = arith.constant 1 : index
    %c0_30 = arith.constant 0 : index
    %59 = vector.load %arg4[%c0_28, %c1_29, %c0_30] : memref<1x4x128xf32, #tpu.memory_space<vmem>>, vector<1x1x128xf32>
    %60 = vector.shape_cast %59 : vector<1x1x128xf32> to vector<1x128xf32>
    %61 = vector.shape_cast %41 : vector<1x128xf32> to vector<1x1x128xf32>
    tpu.vector_store %arg4[%c0_28, %c1_29, %c0_30], %61 {strides = array<i32>} : memref<1x4x128xf32, #tpu.memory_space<vmem>>, vector<1x1x128xf32>,
    %c0_31 = arith.constant 0 : index
    %c2_32 = arith.constant 2 : index
    %c0_33 = arith.constant 0 : index
    %62 = vector.load %arg4[%c0_31, %c2_32, %c0_33] : memref<1x4x128xf32, #tpu.memory_space<vmem>>, vector<1x1x128xf32>
    %63 = vector.shape_cast %62 : vector<1x1x128xf32> to vector<1x128xf32>
    %64 = vector.shape_cast %48 : vector<1x128xf32> to vector<1x1x128xf32>
    tpu.vector_store %arg4[%c0_31, %c2_32, %c0_33], %64 {strides = array<i32>} : memref<1x4x128xf32, #tpu.memory_space<vmem>>, vector<1x1x128xf32>,
    %c0_34 = arith.constant 0 : index
    %c3_35 = arith.constant 3 : index
    %c0_36 = arith.constant 0 : index
    %65 = vector.load %arg4[%c0_34, %c3_35, %c0_36] : memref<1x4x128xf32, #tpu.memory_space<vmem>>, vector<1x1x128xf32>
    %66 = vector.shape_cast %65 : vector<1x1x128xf32> to vector<1x128xf32>
    %67 = vector.shape_cast %55 : vector<1x128xf32> to vector<1x1x128xf32>
    tpu.vector_store %arg4[%c0_34, %c3_35, %c0_36], %67 {strides = array<i32>} : memref<1x4x128xf32, #tpu.memory_space<vmem>>, vector<1x1x128xf32>,
    %68 = arith.subf %48, %34 : vector<1x128xf32>
    %cst_37 = arith.constant 1.000000e+00 : f32
    %69 = vector.broadcast %cst_37 : f32 to vector<1x128xf32>
    %70 = arith.addf %68, %69 : vector<1x128xf32>
    %71 = arith.subf %55, %41 : vector<1x128xf32>
    %cst_38 = arith.constant 1.000000e+00 : f32
    %72 = vector.broadcast %cst_38 : f32 to vector<1x128xf32>
    %73 = arith.addf %71, %72 : vector<1x128xf32>
    %74 = arith.mulf %70, %73 : vector<1x128xf32>
    %c0_39 = arith.constant 0 : index
    %c0_40 = arith.constant 0 : index
    %c0_41 = arith.constant 0 : index
    %75 = vector.load %arg3[%c0_39, %c0_40, %c0_41] : memref<1x128x8xf32, #tpu.memory_space<vmem>>, vector<1x128x1xf32>
    %76 = vector.shape_cast %75 : vector<1x128x1xf32> to vector<128x1xf32>
    %c0_42 = arith.constant 0 : index
    %c0_43 = arith.constant 0 : index
    %c1_44 = arith.constant 1 : index
    %77 = vector.load %arg3[%c0_42, %c0_43, %c1_44] : memref<1x128x8xf32, #tpu.memory_space<vmem>>, vector<1x128x1xf32>
    %78 = vector.shape_cast %77 : vector<1x128x1xf32> to vector<128x1xf32>
    %c0_45 = arith.constant 0 : index
    %c0_46 = arith.constant 0 : index
    %c2_47 = arith.constant 2 : index
    %79 = vector.load %arg3[%c0_45, %c0_46, %c2_47] : memref<1x128x8xf32, #tpu.memory_space<vmem>>, vector<1x128x1xf32>
    %80 = vector.shape_cast %79 : vector<1x128x1xf32> to vector<128x1xf32>
    %c0_48 = arith.constant 0 : index
    %c0_49 = arith.constant 0 : index
    %c3_50 = arith.constant 3 : index
    %81 = vector.load %arg3[%c0_48, %c0_49, %c3_50] : memref<1x128x8xf32, #tpu.memory_space<vmem>>, vector<1x128x1xf32>
    %82 = vector.shape_cast %81 : vector<1x128x1xf32> to vector<128x1xf32>
    %c0_51 = arith.constant 0 : index
    %c0_52 = arith.constant 0 : index
    %c4_53 = arith.constant 4 : index
    %83 = vector.load %arg3[%c0_51, %c0_52, %c4_53] : memref<1x128x8xf32, #tpu.memory_space<vmem>>, vector<1x128x1xf32>
    %84 = vector.shape_cast %83 : vector<1x128x1xf32> to vector<128x1xf32>
    %c0_54 = arith.constant 0 : index
    %c0_55 = arith.constant 0 : index
    %c5_56 = arith.constant 5 : index
    %85 = vector.load %arg3[%c0_54, %c0_55, %c5_56] : memref<1x128x8xf32, #tpu.memory_space<vmem>>, vector<1x128x1xf32>
    %86 = vector.shape_cast %85 : vector<1x128x1xf32> to vector<128x1xf32>
    %c0_57 = arith.constant 0 : index
    %c0_58 = arith.constant 0 : index
    %c6_59 = arith.constant 6 : index
    %87 = vector.load %arg3[%c0_57, %c0_58, %c6_59] : memref<1x128x8xf32, #tpu.memory_space<vmem>>, vector<1x128x1xf32>
    %88 = vector.shape_cast %87 : vector<1x128x1xf32> to vector<128x1xf32>
    %c0_60 = arith.constant 0 : index
    %c0_61 = arith.constant 0 : index
    %c7_62 = arith.constant 7 : index
    %89 = vector.load %arg3[%c0_60, %c0_61, %c7_62] : memref<1x128x8xf32, #tpu.memory_space<vmem>>, vector<1x128x1xf32>
    %90 = vector.shape_cast %89 : vector<1x128x1xf32> to vector<128x1xf32>
    %91 = arith.mulf %76, %84 : vector<128x1xf32>
    %92 = arith.addf %91, %88 : vector<128x1xf32>
    %93 = arith.mulf %78, %86 : vector<128x1xf32>
    %94 = arith.addf %93, %90 : vector<128x1xf32>
    %95 = math.exp %80 : vector<128x1xf32>
    %96 = arith.mulf %95, %84 : vector<128x1xf32>
    %97 = math.exp %82 : vector<128x1xf32>
    %98 = arith.mulf %97, %86 : vector<128x1xf32>
    %cst_63 = arith.constant 5.000000e-01 : f32
    %99 = vector.broadcast %cst_63 : f32 to vector<128x1xf32>
    %100 = arith.mulf %99, %96 : vector<128x1xf32>
    %101 = arith.subf %92, %100 : vector<128x1xf32>
    %cst_64 = arith.constant 0.000000e+00 : f32
    %102 = vector.broadcast %cst_64 : f32 to vector<128x1xf32>
    %103 = arith.maximumf %101, %102 : vector<128x1xf32>
    %104 = vector.broadcast %1 : f32 to vector<128x1xf32>
    %105 = arith.minimumf %103, %104 : vector<128x1xf32>
    %cst_65 = arith.constant 5.000000e-01 : f32
    %106 = vector.broadcast %cst_65 : f32 to vector<128x1xf32>
    %107 = arith.mulf %106, %98 : vector<128x1xf32>
    %108 = arith.subf %94, %107 : vector<128x1xf32>
    %cst_66 = arith.constant 0.000000e+00 : f32
    %109 = vector.broadcast %cst_66 : f32 to vector<128x1xf32>
    %110 = arith.maximumf %108, %109 : vector<128x1xf32>
    %111 = vector.broadcast %3 : f32 to vector<128x1xf32>
    %112 = arith.minimumf %110, %111 : vector<128x1xf32>
    %cst_67 = arith.constant 5.000000e-01 : f32
    %113 = vector.broadcast %cst_67 : f32 to vector<128x1xf32>
    %114 = arith.mulf %113, %96 : vector<128x1xf32>
    %115 = arith.addf %92, %114 : vector<128x1xf32>
    %cst_68 = arith.constant 0.000000e+00 : f32
    %116 = vector.broadcast %cst_68 : f32 to vector<128x1xf32>
    %117 = arith.maximumf %115, %116 : vector<128x1xf32>
    %118 = vector.broadcast %1 : f32 to vector<128x1xf32>
    %119 = arith.minimumf %117, %118 : vector<128x1xf32>
    %cst_69 = arith.constant 5.000000e-01 : f32
    %120 = vector.broadcast %cst_69 : f32 to vector<128x1xf32>
    %121 = arith.mulf %120, %98 : vector<128x1xf32>
    %122 = arith.addf %94, %121 : vector<128x1xf32>
    %cst_70 = arith.constant 0.000000e+00 : f32
    %123 = vector.broadcast %cst_70 : f32 to vector<128x1xf32>
    %124 = arith.maximumf %122, %123 : vector<128x1xf32>
    %125 = vector.broadcast %3 : f32 to vector<128x1xf32>
    %126 = arith.minimumf %124, %125 : vector<128x1xf32>
    %127 = arith.subf %119, %105 : vector<128x1xf32>
    %cst_71 = arith.constant 1.000000e+00 : f32
    %128 = vector.broadcast %cst_71 : f32 to vector<128x1xf32>
    %129 = arith.addf %127, %128 : vector<128x1xf32>
    %130 = arith.subf %126, %112 : vector<128x1xf32>
    %cst_72 = arith.constant 1.000000e+00 : f32
    %131 = vector.broadcast %cst_72 : f32 to vector<128x1xf32>
    %132 = arith.addf %130, %131 : vector<128x1xf32>
    %133 = arith.mulf %129, %132 : vector<128x1xf32>
    %134 = vector.shape_cast %105 : vector<128x1xf32> to vector<128x1xf32>
    %135 = vector.broadcast %134 : vector<128x1xf32> to vector<128x128xf32>
    %136 = vector.shape_cast %112 : vector<128x1xf32> to vector<128x1xf32>
    %137 = vector.broadcast %136 : vector<128x1xf32> to vector<128x128xf32>
    %138 = vector.shape_cast %119 : vector<128x1xf32> to vector<128x1xf32>
    %139 = vector.broadcast %138 : vector<128x1xf32> to vector<128x128xf32>
    %140 = vector.shape_cast %126 : vector<128x1xf32> to vector<128x1xf32>
    %141 = vector.broadcast %140 : vector<128x1xf32> to vector<128x128xf32>
    %142 = vector.shape_cast %133 : vector<128x1xf32> to vector<128x1xf32>
    %143 = vector.broadcast %142 : vector<128x1xf32> to vector<128x128xf32>
    %144 = vector.broadcast %48 : vector<1x128xf32> to vector<128x128xf32>
    %145 = arith.minimumf %139, %144 : vector<128x128xf32>
    %146 = vector.broadcast %34 : vector<1x128xf32> to vector<128x128xf32>
    %147 = arith.maximumf %135, %146 : vector<128x128xf32>
    %148 = arith.subf %145, %147 : vector<128x128xf32>
    %cst_73 = arith.constant 1.000000e+00 : f32
    %149 = vector.broadcast %cst_73 : f32 to vector<128x128xf32>
    %150 = arith.addf %148, %149 : vector<128x128xf32>
    %cst_74 = arith.constant 0.000000e+00 : f32
    %151 = vector.broadcast %cst_74 : f32 to vector<128x128xf32>
    %152 = arith.maximumf %150, %151 : vector<128x128xf32>
    %153 = vector.broadcast %55 : vector<1x128xf32> to vector<128x128xf32>
    %154 = arith.minimumf %141, %153 : vector<128x128xf32>
    %155 = vector.broadcast %41 : vector<1x128xf32> to vector<128x128xf32>
    %156 = arith.maximumf %137, %155 : vector<128x128xf32>
    %157 = arith.subf %154, %156 : vector<128x128xf32>
    %cst_75 = arith.constant 1.000000e+00 : f32
    %158 = vector.broadcast %cst_75 : f32 to vector<128x128xf32>
    %159 = arith.addf %157, %158 : vector<128x128xf32>
    %cst_76 = arith.constant 0.000000e+00 : f32
    %160 = vector.broadcast %cst_76 : f32 to vector<128x128xf32>
    %161 = arith.maximumf %159, %160 : vector<128x128xf32>
    %162 = arith.mulf %152, %161 : vector<128x128xf32>
    %163 = vector.broadcast %74 : vector<1x128xf32> to vector<128x128xf32>
    %164 = arith.addf %143, %163 : vector<128x128xf32>
    %165 = arith.subf %164, %162 : vector<128x128xf32>
    %cst_77 = arith.constant 0.699999988 : f32
    %166 = vector.broadcast %cst_77 : f32 to vector<128x128xf32>
    %167 = arith.mulf %166, %165 : vector<128x128xf32>
    %168 = arith.cmpf ogt, %162, %167 : vector<128x128xf32>
    %169 = tpu.iota {dimensions = array<i32: 0>} : vector<128x128xi32>
    %170 = tpu.iota {dimensions = array<i32: 1>} : vector<128x128xi32>
    %171 = arith.cmpi slt, %170, %169 : vector<128x128xi32>
    %172 = arith.andi %168, %171 : vector<128x128xi1>
    %c128_i32 = arith.constant 128 : i32
    %173 = vector.broadcast %c128_i32 : i32 to vector<128x128xi32>
    %174 = arith.cmpi slt, %170, %173 : vector<128x128xi32>
    %175 = arith.andi %172, %174 : vector<128x128xi1>
    %cst_78 = arith.constant 1.000000e+00 : f32
    %cst_79 = arith.constant 0.000000e+00 : f32
    %176 = vector.broadcast %cst_78 : f32 to vector<128x128xf32>
    %177 = vector.broadcast %cst_79 : f32 to vector<128x128xf32>
    %178 = arith.select %175, %176, %177 : vector<128x128xi1>, vector<128x128xf32>
    %c0_80 = arith.constant 0 : index
    %c0_81 = arith.constant 0 : index
    %179 = vector.load %arg6[%c0_80, %c0_81] : memref<128x128xf32, #tpu.memory_space<vmem>>, vector<128x128xf32>
    tpu.vector_store %arg6[%c0_80, %c0_81], %178 {strides = array<i32>} : memref<128x128xf32, #tpu.memory_space<vmem>>, vector<128x128xf32>,
    %180 = arith.cmpi slt, %169, %170 : vector<128x128xi32>
    %181 = arith.andi %168, %180 : vector<128x128xi1>
    %c128_i32_82 = arith.constant 128 : i32
    %182 = vector.broadcast %c128_i32_82 : i32 to vector<128x128xi32>
    %183 = arith.cmpi slt, %169, %182 : vector<128x128xi32>
    %184 = arith.andi %181, %183 : vector<128x128xi1>
    %cst_83 = arith.constant 1.000000e+00 : f32
    %cst_84 = arith.constant 0.000000e+00 : f32
    %185 = vector.broadcast %cst_83 : f32 to vector<128x128xf32>
    %186 = vector.broadcast %cst_84 : f32 to vector<128x128xf32>
    %187 = arith.select %184, %185, %186 : vector<128x128xi1>, vector<128x128xf32>
    %c0_85 = arith.constant 0 : index
    %c0_86 = arith.constant 0 : index
    %188 = vector.load %arg7[%c0_85, %c0_86] : memref<128x128xf32, #tpu.memory_space<vmem>>, vector<128x128xf32>
    tpu.vector_store %arg7[%c0_85, %c0_86], %187 {strides = array<i32>} : memref<128x128xf32, #tpu.memory_space<vmem>>, vector<128x128xf32>,
    %189 = tpu.iota {dimensions = array<i32: 1>} : vector<1x128xi32>
    %c128_i32_87 = arith.constant 128 : i32
    %190 = vector.broadcast %c128_i32_87 : i32 to vector<1x128xi32>
    %191 = arith.cmpi slt, %189, %190 : vector<1x128xi32>
    %192 = arith.extui %191 : vector<1x128xi1> to vector<1x128xi32>
    %193 = arith.sitofp %192 : vector<1x128xi32> to vector<1x128xf32>
    %194 = tpu.iota {dimensions = array<i32: 0>} : vector<128x1xi32>
    %c128_i32_88 = arith.constant 128 : i32
    %195 = vector.broadcast %c128_i32_88 : i32 to vector<128x1xi32>
    %196 = arith.cmpi slt, %194, %195 : vector<128x1xi32>
    %197 = arith.extui %196 : vector<128x1xi1> to vector<128x1xi32>
    %198 = arith.sitofp %197 : vector<128x1xi32> to vector<128x1xf32>
    %true = arith.constant true
    %199:2 = scf.while (%arg8 = %193, %arg9 = %true) : (vector<1x128xf32>, i1) -> (vector<1x128xf32>, i1) {
      scf.condition(%arg9) %arg8, %arg9 : vector<1x128xf32>, i1
    } do {
    ^bb0(%arg8: vector<1x128xf32>, %arg9: i1):
      %c0_92 = arith.constant 0 : index
      %c0_93 = arith.constant 0 : index
      %203 = vector.load %arg6[%c0_92, %c0_93] : memref<128x128xf32, #tpu.memory_space<vmem>>, vector<128x128xf32>
      %204 = vector.broadcast %arg8 : vector<1x128xf32> to vector<128x128xf32>
      %205 = arith.mulf %203, %204 : vector<128x128xf32>
      %cst_94 = arith.constant dense<0.000000e+00> : vector<128xf32>
      %206 = vector.multi_reduction <add>, %205, %cst_94 [1] : vector<128x128xf32> to vector<128xf32>
      %207 = vector.shape_cast %206 : vector<128xf32> to vector<128x1xf32>
      %cst_95 = arith.constant 5.000000e-01 : f32
      %208 = vector.broadcast %cst_95 : f32 to vector<128x1xf32>
      %209 = arith.cmpf ogt, %207, %208 : vector<128x1xf32>
      %cst_96 = arith.constant 0.000000e+00 : f32
      %cst_97 = arith.constant 1.000000e+00 : f32
      %210 = vector.broadcast %cst_96 : f32 to vector<128x1xf32>
      %211 = vector.broadcast %cst_97 : f32 to vector<128x1xf32>
      %212 = arith.select %209, %210, %211 : vector<128x1xi1>, vector<128x1xf32>
      %213 = arith.mulf %212, %198 : vector<128x1xf32>
      %c0_98 = arith.constant 0 : index
      %c0_99 = arith.constant 0 : index
      %214 = vector.load %arg7[%c0_98, %c0_99] : memref<128x128xf32, #tpu.memory_space<vmem>>, vector<128x128xf32>
      %215 = vector.shape_cast %213 : vector<128x1xf32> to vector<128x1xf32>
      %216 = vector.broadcast %215 : vector<128x1xf32> to vector<128x128xf32>
      %217 = arith.mulf %214, %216 : vector<128x128xf32>
      %cst_100 = arith.constant dense<0.000000e+00> : vector<128xf32>
      %218 = vector.multi_reduction <add>, %217, %cst_100 [0] : vector<128x128xf32> to vector<128xf32>
      %219 = vector.shape_cast %218 : vector<128xf32> to vector<1x128xf32>
      %cst_101 = arith.constant 5.000000e-01 : f32
      %220 = vector.broadcast %cst_101 : f32 to vector<1x128xf32>
      %221 = arith.cmpf ogt, %219, %220 : vector<1x128xf32>
      %cst_102 = arith.constant 0.000000e+00 : f32
      %cst_103 = arith.constant 1.000000e+00 : f32
      %222 = vector.broadcast %cst_102 : f32 to vector<1x128xf32>
      %223 = vector.broadcast %cst_103 : f32 to vector<1x128xf32>
      %224 = arith.select %221, %222, %223 : vector<1x128xi1>, vector<1x128xf32>
      %225 = arith.mulf %224, %193 : vector<1x128xf32>
      %226 = arith.subf %225, %arg8 : vector<1x128xf32>
      %227 = math.absf %226 : vector<1x128xf32>
      %228 = vector.shape_cast %227 : vector<1x128xf32> to vector<1x1x128xf32>
      %cst_104 = arith.constant dense<0.000000e+00> : vector<1xf32>
      %229 = vector.multi_reduction <add>, %228, %cst_104 [1, 2] : vector<1x1x128xf32> to vector<1xf32>
      %230 = vector.shape_cast %229 : vector<1xf32> to vector<1x1x1xf32>
      %231 = vector.extract %230[0, 0, 0] : f32 from vector<1x1x1xf32>
      %cst_105 = arith.constant 0.000000e+00 : f32
      %232 = arith.cmpf ogt, %231, %cst_105 : f32
      scf.yield %225, %232 : vector<1x128xf32>, i1
    }
    %c0_89 = arith.constant 0 : index
    %c0_90 = arith.constant 0 : index
    %c0_91 = arith.constant 0 : index
    %200 = vector.load %arg5[%c0_89, %c0_90, %c0_91] : memref<1x1x128xf32, #tpu.memory_space<vmem>>, vector<1x1x128xf32>
    %201 = vector.shape_cast %200 : vector<1x1x128xf32> to vector<1x128xf32>
    %202 = vector.shape_cast %199#0 : vector<1x128xf32> to vector<1x1x128xf32>
    tpu.vector_store %arg5[%c0_89, %c0_90, %c0_91], %202 {strides = array<i32>} : memref<1x1x128xf32, #tpu.memory_space<vmem>>, vector<1x1x128xf32>,
    return
  }
  func.func @transform_0(%arg0: i32) -> (i32, i32) {
    %c0_i32 = arith.constant 0 : i32
    %c0_i32_0 = arith.constant 0 : i32
    %c0_i32_1 = arith.constant 0 : i32
    return %c0_i32, %c0_i32_0 : i32, i32
  }
  func.func @transform_1(%arg0: i32) -> (i32, i32, i32) {
    %c0_i32 = arith.constant 0 : i32
    %c0_i32_0 = arith.constant 0 : i32
    %c0_i32_1 = arith.constant 0 : i32
    return %arg0, %c0_i32, %c0_i32_0 : i32, i32, i32
  }
  func.func @transform_2(%arg0: i32) -> (i32, i32, i32) {
    %c0_i32 = arith.constant 0 : i32
    %c0_i32_0 = arith.constant 0 : i32
    %c0_i32_1 = arith.constant 0 : i32
    return %arg0, %c0_i32, %c0_i32_0 : i32, i32, i32
  }
  func.func @transform_3(%arg0: i32) -> (i32, i32, i32) {
    %c0_i32 = arith.constant 0 : i32
    %c0_i32_0 = arith.constant 0 : i32
    %c0_i32_1 = arith.constant 0 : i32
    return %arg0, %c0_i32, %c0_i32_0 : i32, i32, i32
  }
  func.func @transform_4(%arg0: i32) -> (i32, i32, i32) {
    %c0_i32 = arith.constant 0 : i32
    %c0_i32_0 = arith.constant 0 : i32
    %c0_i32_1 = arith.constant 0 : i32
    return %arg0, %c0_i32, %c0_i32_0 : i32, i32, i32
  }
}

</mosaic_0001>

<bundles_post_ra>
// kernel: tpu_custom_call.1
= control target key start
LH: loop header
LB: loop body
LE: loop exit
PB: predicated region body
PF: predicated region fallthrough
CT: control target
= control target key end

     0   :  { %10 = vsyncpa [#allocation6], 0  ;;  %s3914_s0 = inlined_call_operand.vmem [shape: f32[2,2], index: 0, kind: input, shape index: {}]   ;;  %s3915_s1 = inlined_call_operand.vmem [shape: f32[2,8,128], index: 1, kind: input, shape index: {}]   ;;  %s3916_s2 = inlined_call_operand.vmem [shape: f32[2,128,8], index: 2, kind: input, shape index: {}]   ;;  %s3917_s3 = inlined_call_operand.hbm [shape: f32[2,4,128], index: 3, kind: output, shape index: {0}]   ;;  %s3918_s4 = inlined_call_operand.hbm [shape: f32[2,1,128], index: 4, kind: output, shape index: {1}]  }
   0x1   :  { %11 = vsyncpa [#allocation5], 0 }
   0x2   :  { %13 = vsyncpa [#allocation5 + $0x1], 0 }
   0x3   :  { %14 = vsyncpa [#allocation9], 0 }
   0x4   :  { %16 = vsyncpa [#allocation9 + $0x1], 0  ;;  %s2407_s15 = smov 0   ;;  %s2409_s16 = smov 0  }
   0x5   :  { %s2411_s17 = smov 0   ;;  %s2413_s18 = smov 0  }
   0x6 LB: > { %s2428_s19 = sadd.s32 4294967295, %s2365_s18   ;;  %s2119_s20 = sadd.s32 4294967294, %s2365_s18   ;;  %s2365_s18 = sphi %s2413_s18, %s4022_s18   ;;  %s2361_s17 = sphi %s2411_s17, %s4021_s17   ;;  %s2357_s16 = sphi %s2409_s16, %s4020_s16   ;;  %s2353_s15 = sphi %s2407_s15, %s4019_s15  }
   0x7   : > { %s2432_s21 = sadd.s32 1, %s2365_s18   ;;  %s102_s22 = sadd.s32 1, %s2361_s17 }
   0x8   : > { %s99_s23 = ssub.s32 %s2365_s18, %s2432_s21  ;;  %p112_p0 = scmp.ne.s32.totalorder %s2361_s17, %s2357_s16 }
   0x9   : > { %p100_p1 = scmp.eq.s32.totalorder %s99_s23, 0  ;;  %p113_p2 = scmp.eq.s32.totalorder %s2428_s19, 1 }
   0xa   : > { %p118_p3 = scmp.ne.s32.totalorder %s2357_s16, %s2353_s15  ;;  %p119_p4 = scmp.eq.s32.totalorder %s2119_s20, 1 }
   0xb   : > { %s2443_s24 = scalar_select %p100_p1, %s2361_s17, %s102_s22  }
   0xc   : > { %p2445_p5 = por %p113_p2, %p112_p0  ;;  %p2449_p6 = por %p119_p4, %p118_p3 }
   0xd   : > { %p2120_p7 = scmp.ge.s32.totalorder %s2365_s18, 1  ;;  %p152_p8 = scmp.lt.s32.totalorder %s2365_s18, 3 }
   0xe   : > { %p2157_p9 = scmp.eq.s32.totalorder %s2428_s19, 0  ;;  %s165_s30 = sshll.u32 %s3914_s0, 4  ;;  %s166_s30 = int_to_ptr.vmem [resolvable:$true] %s165_s30 }
   0xf   : > { %p2456_p10 = pnand %p2120_p7, %p152_p8  ;;  %s2252_s5 = scalar_lea.vmem %s166_s30, 32 }
  0x10   : > { %p2253_p13 = scmp.ne.s32.totalorder %s166_s30, %s2252_s5  ;;  %p2260_p3 = scmp.lt.s32.totalorder %s166_s30, %s166_s30 }
  0x11   : > { %p2146_p11 = pneg %p2456_p10  ;;  %p2261_p4 = scmp.lt.s32.totalorder %s2252_s5, %s2252_s5 }
  0x13   : > { %p2147_p12 = pnand %p2157_p9, %p2146_p11  ;;  %p2262_p7 = por %p2261_p4, %p2260_p3 }
  0x15   : > { %p2254_p0 = pneg %p2147_p12 }
  0x17   : > { %p2255_p1 = pnand %p2254_p0, %p2253_p13 }
  0x19   : > { %p2256_p2 = pneg %p2255_p1 }
  0x1b   : > { %p2263_p8 = pnand %p2262_p7, %p2256_p2 }
  0x1d   : > { %2266 = shalt.err (!%p2263_p8)
}
  0x1e   : > { %s2371_s6 = smov [#allocation4]   ;;  %193 = sbr.rel (%p2456_p10) target bundleno = 1180 (0x49c), region = 32 }
  0x1f   : > { %2149 = dma.vmem_to_smem (!%p2147_p12), %s166_s30, 32, %s2371_s6, [#allocation6]  }
  0x23   : > { %2340 = dma.done.wait (%p2157_p9), [#allocation6], 32  }
  0x24   : > { %2342 = vsyncadd (%p2157_p9), [#allocation6], 4294967264 }
  0x25   : > { %199 = sfence }
  0x26   : > { %p228_p11 = scmp.lt.s32.totalorder %s2428_s19, 1  ;;  %s2372_s12 = smov 124   ;;  %v3919_v60 = vmov 1   ;;  %v3921_v61 = vmov 0  }
  0x27   : > { %s2373_s13 = smov 122   ;;  %s2374_s14 = smov 126   ;;  %2211 = vset.pattern.permute.xlu0 %v3919_v60  ;;  %2209 = vset.pattern.permute.xlu1 %v3921_v61 }
  0x28   : > { %s2475_s7 = scalar_select %p228_p11, %s2428_s19, 1 }
  0x29   : > { %s2129_s20 = sshll.u32 %s2428_s19, 7  ;;  %s2705_s28 = sand.u32 1, %s2357_s16  }
  0x2a   : > { %s2135_s8 = sshll.u32 %s2475_s7, 7  ;;  %s239_s22 = sadd.s32 1, %s2129_s20 }
  0x2b   : > { %s2481_s11 = scalar_lea.vmem %s3916_s2, %s2135_s8  ;;  %s238_s23 = sld [smem:[#allocation4 + %s2129_s20]] }
  0x2c   : > { %v2484_v0 = vld [vmem:[%s2481_s11 + $0x10] sm:$0xff]  ;;  %v2487_v1 = vld [vmem:[%s2481_s11] sm:$0xff]  ;;  %v2492_v2 = vld [vmem:[%s2481_s11 + $0x18] sm:$0xff]  ;;  %s240_s27 = sld [smem:[#allocation4 + %s239_s22]]  ;;  %s2126_s29 = sshll.u32 %s2475_s7, 3 }
  0x2d   : > { %320 = vrot.lane.b32.xlu1 %v2484_v0, %s2372_s12  ;;  %316 = vrot.lane.b32.xlu0 %v2487_v1, %s2372_s12  ;;  %v2495_v3 = vld [vmem:[%s2481_s11 + $0x8] sm:$0xff]  ;;  %v2503_v5 = vld [vmem:[%s2481_s11 + $0x20] sm:$0xff]  ;;  %v444_v38 = vmul.f32 1.442695, %v2487_v1  ;;  %v448_v42 = vmul.f32 1.442695, %v2484_v0  ;;  %s2830_s6 = scalar_lea.vmem %s3915_s1, %s2126_s29 }
  0x2e   : > { %v2500_v4 = vld [vmem:[%s2481_s11 + $0x28] sm:$0xff]  ;;  %v2508_v6 = vld [vmem:[%s2481_s11 + $0x38] sm:$0xff]  ;;  %v2511_v7 = vld [vmem:[%s2481_s11 + $0x30] sm:$0xff]  ;;  %v446_v41 = vmul.f32 1.442695, %v2495_v3  ;;  %s2377_s7 = smov 127  }
  0x2f   : > { %v2516_v8 = vld [vmem:[%s2481_s11 + $0x48] sm:$0xff]  ;;  %v2519_v9 = vld [vmem:[%s2481_s11 + $0x40] sm:$0xff]  ;;  %v2524_v10 = vld [vmem:[%s2481_s11 + $0x58] sm:$0xff]  ;;  %2216 = vpow2.f32 %v444_v38  ;;  %v450_v45 = vmul.f32 1.442695, %v2492_v2  ;;  %s2125_s8 = sshll.u32 %s2705_s28, 2 }
  0x30   : > { %v2527_v11 = vld [vmem:[%s2481_s11 + $0x50] sm:$0xff]  ;;  %v2532_v12 = vld [vmem:[%s2481_s11 + $0x68] sm:$0xff]  ;;  %v2535_v13 = vld [vmem:[%s2481_s11 + $0x60] sm:$0xff]  ;;  %2218 = vpow2.f32 %v446_v41  ;;  %v454_v46 = vmul.f32 1.442695, %v2500_v4  ;;  %s3043_s9 = scalar_lea.vmem [#allocation7], %s2125_s8 }
  0x31   : > { %322 = vrot.lane.b32.xlu1 %v2492_v2, %s2372_s12  ;;  %318 = vrot.lane.b32.xlu0 %v2495_v3, %s2372_s12  ;;  %3946 = vst [vmem:[#allocation13_spill] sm:$0xff] %v2532_v12  ;;  %v2540_v14 = vld [vmem:[%s2481_s11 + $0x78] sm:$0xff]  ;;  %v2543_v15 = vld [vmem:[%s2481_s11 + $0x70] sm:$0xff]  ;;  %2220 = vpow2.f32 %v448_v42  ;;  %v452_v49 = vmul.f32 1.442695, %v2503_v5  ;;  %s227_s10 = scalar_lea.vmem [#allocation8], %s2705_s28 }
  0x32   : > { %2222 = vpow2.f32 %v450_v45  ;;  %v458_v50 = vmul.f32 1.442695, %v2508_v6  ;;  %v456_v53 = vmul.f32 1.442695, %v2511_v7  ;;  %v462_v54 = vmul.f32 1.442695, %v2516_v8 }
  0x33   : > { %2224 = vpow2.f32 %v454_v46  ;;  %v460_v58 = vmul.f32 1.442695, %v2519_v9  ;;  %v466_v62 = vmul.f32 1.442695, %v2524_v10  ;;  %v464_v42 = vmul.f32 1.442695, %v2527_v11 }
  0x34   : > { %2226 = vpow2.f32 %v452_v49  ;;  %v470_v60 = vmul.f32 1.442695, %v2532_v12 }
  0x35   : > { %326 = vrot.lane.b32.xlu1 %v2500_v4, %s2372_s12  ;;  %324 = vrot.lane.b32.xlu0 %v2503_v5, %s2372_s12  ;;  %2228 = vpow2.f32 %v458_v50 }
  0x36   : > { %2230 = vpow2.f32 %v456_v53 }
  0x37   : > { %2232 = vpow2.f32 %v462_v54  ;;  %v468_v54 = vmul.f32 1.442695, %v2535_v13 }
  0x38   : > { %2234 = vpow2.f32 %v460_v58 }
  0x39   : > { %330 = vrot.lane.b32.xlu1 %v2508_v6, %s2372_s12  ;;  %328 = vrot.lane.b32.xlu0 %v2511_v7, %s2372_s12  ;;  %2236 = vpow2.f32 %v466_v62  ;;  %v474_v62 = vmul.f32 1.442695, %v2540_v14 }
  0x3a   : > { %2238 = vpow2.f32 %v464_v42  ;;  %v472_v42 = vmul.f32 1.442695, %v2543_v15 }
  0x3b   : > { %2240 = vpow2.f32 %v470_v60 }
  0x3c   : > { %v2217_v57 = vpop.eup %2216  ;;  %2242 = vpow2.f32 %v468_v54 }
  0x3d   : > { %334 = vrot.lane.b32.xlu1 %v2516_v8, %s2372_s12  ;;  %332 = vrot.lane.b32.xlu0 %v2519_v9, %s2372_s12  ;;  %v2219_v59 = vpop.eup %2218  ;;  %2244 = vpow2.f32 %v474_v62 }
  0x3e   : > { %v2221_v41 = vpop.eup %2220  ;;  %2246 = vpow2.f32 %v472_v42 }
  0x3f   : > { %v2223_v49 = vpop.eup %2222 }
  0x40   : > { %v2225_v61 = vpop.eup %2224 }
  0x41   : > { %338 = vrot.lane.b32.xlu1 %v2524_v10, %s2372_s12  ;;  %336 = vrot.lane.b32.xlu0 %v2527_v11, %s2372_s12  ;;  %v2227_v58 = vpop.eup %2226 }
  0x45   : > { %342 = vrot.lane.b32.xlu1 %v2532_v12, %s2372_s12  ;;  %340 = vrot.lane.b32.xlu0 %v2535_v13, %s2372_s12 }
  0x49   : > { %346 = vrot.lane.b32.xlu1 %v2540_v14, %s2372_s12  ;;  %344 = vrot.lane.b32.xlu0 %v2543_v15, %s2372_s12 }
  0x4d   : > { %382 = vrot.lane.b32.xlu1 %v2495_v3, %s2373_s13  ;;  %380 = vrot.lane.b32.xlu0 %v2487_v1, %s2373_s13 }
  0x51   : > { %386 = vrot.lane.b32.xlu1 %v2492_v2, %s2373_s13  ;;  %384 = vrot.lane.b32.xlu0 %v2484_v0, %s2373_s13 }
  0x55   : > { %390 = vrot.lane.b32.xlu1 %v2500_v4, %s2373_s13  ;;  %388 = vrot.lane.b32.xlu0 %v2503_v5, %s2373_s13 }
  0x59   : > { %394 = vrot.lane.b32.xlu1 %v2508_v6, %s2373_s13  ;;  %392 = vrot.lane.b32.xlu0 %v2511_v7, %s2373_s13 }
  0x5d   : > { %398 = vrot.lane.b32.xlu1 %v2516_v8, %s2373_s13  ;;  %396 = vrot.lane.b32.xlu0 %v2519_v9, %s2373_s13 }
  0x61   : > { %402 = vrot.lane.b32.xlu1 %v2524_v10, %s2373_s13  ;;  %400 = vrot.lane.b32.xlu0 %v2527_v11, %s2373_s13 }
  0x65   : > { %406 = vrot.lane.b32.xlu1 %v2532_v12, %s2373_s13  ;;  %404 = vrot.lane.b32.xlu0 %v2535_v13, %s2373_s13 }
  0x69   : > { %410 = vrot.lane.b32.xlu1 %v2540_v14, %s2373_s13  ;;  %408 = vrot.lane.b32.xlu0 %v2543_v15, %s2373_s13 }
  0x6d   : > { %478 = vrot.lane.b32.xlu1 %v2495_v3, %s2374_s14  ;;  %476 = vrot.lane.b32.xlu0 %v2487_v1, %s2374_s14 }
  0x71   : > { %482 = vrot.lane.b32.xlu1 %v2492_v2, %s2374_s14  ;;  %480 = vrot.lane.b32.xlu0 %v2484_v0, %s2374_s14 }
  0x75   : > { %486 = vrot.lane.b32.xlu1 %v2500_v4, %s2374_s14  ;;  %484 = vrot.lane.b32.xlu0 %v2503_v5, %s2374_s14 }
  0x79   : > { %490 = vrot.lane.b32.xlu1 %v2508_v6, %s2374_s14  ;;  %488 = vrot.lane.b32.xlu0 %v2511_v7, %s2374_s14 }
  0x7d   : > { %494 = vrot.lane.b32.xlu1 %v2516_v8, %s2374_s14  ;;  %492 = vrot.lane.b32.xlu0 %v2519_v9, %s2374_s14 }
  0x81   : > { %498 = vrot.lane.b32.xlu1 %v2524_v10, %s2374_s14  ;;  %496 = vrot.lane.b32.xlu0 %v2527_v11, %s2374_s14 }
  0x85   : > { %502 = vrot.lane.b32.xlu1 %v2532_v12, %s2374_s14  ;;  %500 = vrot.lane.b32.xlu0 %v2535_v13, %s2374_s14 }
  0x89   : > { %506 = vrot.lane.b32.xlu1 %v2540_v14, %s2374_s14  ;;  %504 = vrot.lane.b32.xlu0 %v2543_v15, %s2374_s14 }
  0x9f   : > { %v2595_v16 = vpop.permute.xlu1 %320  ;;  %v2597_v17 = vpop.permute.xlu0 %316 }
  0xa3   : > { %v2599_v18 = vpop.permute.xlu1 %322  ;;  %v2601_v19 = vpop.permute.xlu0 %318 }
  0xa7   : > { %v2603_v20 = vpop.permute.xlu1 %326  ;;  %v2605_v21 = vpop.permute.xlu0 %324 }
  0xab   : > { %v2607_v22 = vpop.permute.xlu1 %330  ;;  %v2609_v23 = vpop.permute.xlu0 %328 }
  0xaf   : > { %v2611_v24 = vpop.permute.xlu1 %334  ;;  %v2613_v25 = vpop.permute.xlu0 %332 }
  0xb3   : > { %v2615_v26 = vpop.permute.xlu1 %338  ;;  %v2617_v27 = vpop.permute.xlu0 %336 }
  0xb7   : > { %v2619_v28 = vpop.permute.xlu1 %342  ;;  %v2621_v29 = vpop.permute.xlu0 %340 }
  0xb8   : > { %3947 = vst [vmem:[#allocation14_spill] sm:$0xff] %v2619_v28 }
  0xbb   : > { %v2623_v30 = vpop.permute.xlu1 %346  ;;  %v2625_v31 = vpop.permute.xlu0 %344 }
  0xbc   : > { %3948 = vst [vmem:[#allocation15_spill] sm:$0xff] %v2623_v30 }
  0xbf   : > { %v2627_v32 = vpop.permute.xlu1 %382  ;;  %v2629_v33 = vpop.permute.xlu0 %380 }
  0xc3   : > { %v2631_v34 = vpop.permute.xlu1 %386  ;;  %v2633_v35 = vpop.permute.xlu0 %384 }
  0xc7   : > { %v2635_v36 = vpop.permute.xlu1 %390  ;;  %v2637_v37 = vpop.permute.xlu0 %388 }
  0xcb   : > { %v2640_v39 = vpop.permute.xlu1 %394  ;;  %v2642_v40 = vpop.permute.xlu0 %392 }
  0xcf   : > { %v2646_v43 = vpop.permute.xlu1 %398  ;;  %v2648_v44 = vpop.permute.xlu0 %396 }
  0xd3   : > { %v2652_v47 = vpop.permute.xlu1 %402  ;;  %v2654_v48 = vpop.permute.xlu0 %400 }
  0xd7   : > { %v2658_v51 = vpop.permute.xlu1 %406  ;;  %v2660_v52 = vpop.permute.xlu0 %404 }
  0xd8   : > { %3949 = vst [vmem:[#allocation16_spill] sm:$0xff] %v2658_v51 }
  0xdb   : > { %v2664_v55 = vpop.permute.xlu1 %410  ;;  %v2666_v56 = vpop.permute.xlu0 %408 }
  0xdc   : > { %3950 = vst [vmem:[#allocation17_spill] sm:$0xff] %v2664_v55 }
  0xdf   : > { %v479_v63 = vpop.permute.xlu1 %478  ;;  %v477_v38 = vpop.permute.xlu0 %476 }
  0xe0   : > { %v525_v45 = vmul.f32 %v2219_v59, %v479_v63  ;;  %v524_v46 = vmul.f32 %v2217_v57, %v477_v38 }
  0xe2   : > { %v541_v50 = vmul.f32 0.5, %v525_v45  ;;  %v540_v53 = vmul.f32 0.5, %v524_v46  ;;  %v2229_v45 = vpop.eup %2228 }
  0xe3   : > { %v483_v55 = vpop.permute.xlu1 %482  ;;  %v481_v51 = vpop.permute.xlu0 %480 }
  0xe4   : > { %v527_v30 = vmul.f32 %v2223_v49, %v483_v55  ;;  %v526_v28 = vmul.f32 %v2221_v41, %v481_v51  ;;  %574 = vrot.lane.b32.xlu1 %v541_v50, %s2374_s14  ;;  %572 = vrot.lane.b32.xlu0 %v540_v53, %s2374_s14  ;;  %v2231_v51 = vpop.eup %2230 }
  0xe5   : > { %v2233_v60 = vpop.eup %2232 }
  0xe6   : > { %v543_v57 = vmul.f32 0.5, %v527_v30  ;;  %v542_v59 = vmul.f32 0.5, %v526_v28 }
  0xe7   : > { %v487_v63 = vpop.permute.xlu1 %486  ;;  %v485_v38 = vpop.permute.xlu0 %484 }
  0xe8   : > { %v529_v46 = vmul.f32 %v2225_v61, %v487_v63  ;;  %v528_v12 = vmul.f32 %v2227_v58, %v485_v38  ;;  %578 = vrot.lane.b32.xlu1 %v543_v57, %s2374_s14  ;;  %576 = vrot.lane.b32.xlu0 %v542_v59, %s2374_s14  ;;  %v2235_v61 = vpop.eup %2234 }
  0xe9   : > { %v2237_v59 = vpop.eup %2236 }
  0xea   : > { %v545_v55 = vmul.f32 0.5, %v529_v46  ;;  %v544_v41 = vmul.f32 0.5, %v528_v12  ;;  %v2239_v12 = vpop.eup %2238 }
  0xeb   : > { %v491_v28 = vpop.permute.xlu1 %490  ;;  %v489_v30 = vpop.permute.xlu0 %488 }
  0xec   : > { %v531_v49 = vmul.f32 %v2229_v45, %v491_v28  ;;  %v530_v50 = vmul.f32 %v2231_v51, %v489_v30  ;;  %582 = vrot.lane.b32.xlu1 %v545_v55, %s2374_s14  ;;  %580 = vrot.lane.b32.xlu0 %v544_v41, %s2374_s14  ;;  %v2241_v51 = vpop.eup %2240 }
  0xed   : > { %v2243_v28 = vpop.eup %2242 }
  0xee   : > { %v547_v53 = vmul.f32 0.5, %v531_v49  ;;  %v546_v54 = vmul.f32 0.5, %v530_v50 }
  0xef   : > { %v495_v58 = vpop.permute.xlu1 %494  ;;  %v493_v57 = vpop.permute.xlu0 %492 }
  0xf0   : > { %v533_v63 = vmul.f32 %v2233_v60, %v495_v58  ;;  %v532_v38 = vmul.f32 %v2235_v61, %v493_v57  ;;  %586 = vrot.lane.b32.xlu1 %v547_v53, %s2374_s14  ;;  %584 = vrot.lane.b32.xlu0 %v546_v54, %s2374_s14  ;;  %v2245_v61 = vpop.eup %2244 }
  0xf1   : > { %v2247_v58 = vpop.eup %2246 }
  0xf2   : > { %v549_v62 = vmul.f32 0.5, %v533_v63  ;;  %v548_v45 = vmul.f32 0.5, %v532_v38 }
  0xf3   : > { %v499_v42 = vpop.permute.xlu1 %498  ;;  %v497_v46 = vpop.permute.xlu0 %496 }
  0xf4   : > { %v535_v55 = vmul.f32 %v2237_v59, %v499_v42  ;;  %v534_v41 = vmul.f32 %v2239_v12, %v497_v46  ;;  %590 = vrot.lane.b32.xlu1 %v549_v62, %s2374_s14  ;;  %588 = vrot.lane.b32.xlu0 %v548_v45, %s2374_s14  ;;  %v365_v46 = vmul.f32 %v2601_v19, %v2495_v3 }
  0xf5   : > { %v368_v3 = vmul.f32 %v2605_v21, %v2503_v5  ;;  %v370_v5 = vmul.f32 %v2609_v23, %v2511_v7 }
  0xf6   : > { %v551_v30 = vmul.f32 0.5, %v535_v55  ;;  %v550_v60 = vmul.f32 0.5, %v534_v41 }
  0xf7   : > { %v503_v49 = vpop.permute.xlu1 %502  ;;  %v501_v50 = vpop.permute.xlu0 %500  ;;  %v434_v21 = vadd.f32 %v2642_v40, %v370_v5 }
  0xf8   : > { %v537_v53 = vmul.f32 %v2241_v51, %v503_v49  ;;  %v536_v54 = vmul.f32 %v2243_v28, %v501_v50  ;;  %594 = vrot.lane.b32.xlu1 %v551_v30, %s2374_s14  ;;  %592 = vrot.lane.b32.xlu0 %v550_v60, %s2374_s14  ;;  %v429_v51 = vadd.f32 %v2627_v32, %v365_v46  ;;  %v2700_v50 = vstv %s238_s23 }
  0xf9   : > { %v366_v30 = vmul.f32 %v2595_v16, %v2484_v0  ;;  %v2710_v32 = vadd.f32 %v2637_v37, %v368_v3  ;;  %v376_v3 = vmul.f32 %v2621_v29, %v2535_v13  ;;  %v378_v13 = vmul.f32 %v2625_v31, %v2543_v15 }
  0xfa   : > { %v553_v57 = vmul.f32 0.5, %v537_v53  ;;  %v552_v59 = vmul.f32 0.5, %v536_v54 }
  0xfb   : > { %v507_v63 = vpop.permute.xlu1 %506  ;;  %v505_v38 = vpop.permute.xlu0 %504  ;;  %v430_v49 = vadd.f32 %v2633_v35, %v366_v30 }
  0xfc   : > { %v539_v12 = vmul.f32 %v2245_v61, %v507_v63  ;;  %v538_v62 = vmul.f32 %v2247_v58, %v505_v38  ;;  %598 = vrot.lane.b32.xlu1 %v553_v57, %s2374_s14  ;;  %596 = vrot.lane.b32.xlu0 %v552_v59, %s2374_s14  ;;  %v2702_v61 = vstv %s240_s27  ;;  %v372_v63 = vmul.f32 %v2613_v25, %v2519_v9 }
  0xfd   : > { %v364_v9 = vmul.f32 %v2597_v17, %v2487_v1  ;;  %v374_v25 = vmul.f32 %v2617_v27, %v2527_v11 }
  0xfe   : > { %v555_v45 = vmul.f32 0.5, %v539_v12  ;;  %v554_v42 = vmul.f32 0.5, %v538_v62  ;;  %v436_v7 = vadd.f32 %v2648_v44, %v372_v63 }
  0xff   : > { %v428_v30 = vadd.f32 %v2629_v33, %v364_v9  ;;  %v2767_v33 = vadd.f32 %v2660_v52, %v376_v3 }
 0x100   : > { %602 = vrot.lane.b32.xlu1 %v555_v45, %s2374_s14  ;;  %600 = vrot.lane.b32.xlu0 %v554_v42, %s2374_s14 }
 0x156   : > { %v575_v55 = vpop.permute.xlu1 %574  ;;  %v573_v41 = vpop.permute.xlu0 %572 }
 0x157   : > { %v621_v28 = vsub.f32 %v429_v51, %v575_v55  ;;  %v620_v1 = vsub.f32 %v428_v30, %v573_v41  ;;  %v684_v11 = vadd.f32 %v573_v41, %v428_v30  ;;  %v685_v41 = vadd.f32 %v575_v55, %v429_v51 }
 0x159   : > { %v637_v60 = vmax.f32 %v621_v28, 0.0  ;;  %v636_v5 = vmax.f32 %v620_v1, 0.0 }
 0x15a   : > { %v577_v53 = vpop.permute.xlu0 %576  ;;  %v2771_v29 = vpop.permute.xlu1 %578 }
 0x15b   : > { %v622_v19 = vsub.f32 %v430_v49, %v577_v53  ;;  %v2713_v54 = vmin.f32 %v637_v60, %v2700_v50  ;;  %v2716_v0 = vmin.f32 %v637_v60, %v2702_v61  ;;  %v438_v60 = vadd.f32 %v2654_v48, %v374_v25 }
 0x15c   : > { %v686_v52 = vadd.f32 %v577_v53, %v430_v49  ;;  %v668_v55 = vmin.f32 %v636_v5, %v2702_v61 }
 0x15d   : > { %3951 = vst [vmem:[#allocation18_spill] sm:$0xff] %v2713_v54  ;;  %v2718_v16 = vmax.f32 %v622_v19, 0.0  ;;  %899 = vperm.xlu1 %2209, %v2713_v54   ;;  %979 = vperm.xlu0 %2211, %v2716_v0  }
 0x15e   : > { %v581_v35 = vpop.permute.xlu0 %580  ;;  %v702_v9 = vmax.f32 %v686_v52, 0.0  ;;  %v2799_v25 = vpop.permute.xlu1 %582 }
 0x15f   : > { %v624_v58 = vsub.f32 %v2710_v32, %v581_v35  ;;  %v2728_v57 = vmin.f32 %v2718_v16, %v2700_v50 }
 0x161   : > { %v640_v37 = vmax.f32 %v624_v58, 0.0  ;;  %3952 = vst [vmem:[#allocation19_spill] sm:$0xff] %v2728_v57  ;;  %904 = vperm.xlu1 %2209, %v2728_v57  }
 0x162   : > { %v585_v59 = vpop.permute.xlu0 %584 }
 0x163   : > { %v626_v38 = vsub.f32 %v434_v21, %v585_v59  ;;  %v2734_v12 = vmin.f32 %v640_v37, %v2702_v61  ;;  %v2737_v62 = vmin.f32 %v640_v37, %v2700_v50  ;;  %v700_v37 = vmax.f32 %v684_v11, 0.0 }
 0x164   : > { %v690_v1 = vadd.f32 %v585_v59, %v434_v21  ;;  %v670_v21 = vmin.f32 %v2718_v16, %v2702_v61  ;;  %v2824_v59 = vmin.f32 %v702_v9, %v2702_v61  ;;  %v2838_v16 = vmin.f32 %v636_v5, %v2700_v50 }
 0x165   : > { %3953 = vst [vmem:[#allocation20_spill] sm:$0xff] %v2737_v62  ;;  %v642_v23 = vmax.f32 %v626_v38, 0.0  ;;  %994 = vperm.xlu0 %2211, %v2734_v12   ;;  %914 = vperm.xlu1 %2209, %v2737_v62   ;;  %v2778_v38 = vadd.f32 %v2666_v56, %v378_v13  ;;  %v701_v56 = vmax.f32 %v685_v41, 0.0  ;;  %v2794_v49 = vmin.f32 %v700_v37, %v2702_v61 }
 0x166   : > { %v589_v40 = vpop.permute.xlu0 %588  ;;  %3960 = vst [vmem:[#allocation27_spill] sm:$0xff] %v2824_v59  ;;  %v782_v52 = vsub.f32 %v2824_v59, %v670_v21 }
 0x167   : > { %v628_v45 = vsub.f32 %v436_v7, %v589_v40  ;;  %v2747_v46 = vmin.f32 %v642_v23, %v2702_v61  ;;  %v2750_v28 = vmin.f32 %v642_v23, %v2700_v50  ;;  %3957 = vst [vmem:[#allocation24_spill] sm:$0xff] %v2794_v49  ;;  %v2819_v13 = vmin.f32 %v701_v56, %v2702_v61 }
 0x169   : > { %v644_v42 = vmax.f32 %v628_v45, 0.0  ;;  %3954 = vst [vmem:[#allocation21_spill] sm:$0xff] %v2750_v28  ;;  %1004 = vperm.xlu0 %2211, %v2747_v46   ;;  %924 = vperm.xlu1 %2209, %v2750_v28  }
 0x16a   : > { %v593_v44 = vpop.permute.xlu0 %592 }
 0x16b   : > { %v630_v17 = vsub.f32 %v438_v60, %v593_v44  ;;  %v2759_v27 = vmin.f32 %v644_v42, %v2702_v61  ;;  %v2762_v19 = vmin.f32 %v644_v42, %v2700_v50  ;;  %v688_v42 = vadd.f32 %v581_v35, %v2710_v32 }
 0x16c   : > { %v692_v32 = vadd.f32 %v589_v40, %v436_v7  ;;  %v2816_v35 = vadd.f32 %v593_v44, %v438_v60  ;;  %v2840_v7 = vpop.permute.xlu1 %586  ;;  %v706_v40 = vmax.f32 %v690_v1, 0.0  ;;  %v2845_v44 = vmin.f32 %v700_v37, %v2700_v50 }
 0x16d   : > { %3955 = vst [vmem:[#allocation22_spill] sm:$0xff] %v2762_v19  ;;  %v646_v48 = vmax.f32 %v630_v17, 0.0  ;;  %1014 = vperm.xlu0 %2211, %v2759_v27   ;;  %934 = vperm.xlu1 %2209, %v2762_v19   ;;  %v704_v41 = vmax.f32 %v688_v42, 0.0  ;;  %v2848_v60 = vmin.f32 %v702_v9, %v2700_v50  ;;  %v244_v42 = vld [vmem:[%s2830_s6 + $0x3] sm:$0x1]  ;;  %v371_v37 = vmul.f32 %v2607_v22, %v2508_v6 }
 0x16e   : > { %v2764_v58 = vpop.permute.xlu0 %596  ;;  %v3961_v6 = vmov 1  }
 0x16f   : > { %v632_v63 = vsub.f32 %v2767_v33, %v2764_v58  ;;  %v2781_v23 = vmin.f32 %v646_v48, %v2702_v61  ;;  %v2784_v15 = vmin.f32 %v646_v48, %v2700_v50  ;;  %v367_v48 = vmul.f32 %v2599_v18, %v2492_v2 }
 0x170   : > { %v369_v2 = vmul.f32 %v2603_v20, %v2500_v4  ;;  %v708_v4 = vmax.f32 %v692_v32, 0.0  ;;  %v710_v20 = vmax.f32 %v2816_v35, 0.0  ;;  %v2867_v1 = vmin.f32 %v704_v41, %v2700_v50 }
 0x171   : > { %3956 = vst [vmem:[#allocation23_spill] sm:$0xff] %v2784_v15  ;;  %v648_v45 = vmax.f32 %v632_v63, 0.0  ;;  %1024 = vperm.xlu0 %2211, %v2781_v23   ;;  %944 = vperm.xlu1 %2209, %v2784_v15   ;;  %v780_v63 = vsub.f32 %v2794_v49, %v668_v55  ;;  %v2835_v18 = vadd.f32 %v2631_v34, %v367_v48 }
 0x172   : > { %v2786_v31 = vpop.permute.xlu0 %600  ;;  %v2852_v34 = vmin.f32 %v704_v41, %v2702_v61  ;;  %v2862_v9 = vadd.f32 %v2635_v36, %v369_v2  ;;  %v2870_v48 = vmin.f32 %v701_v56, %v2700_v50  ;;  %v2873_v32 = vmin.f32 %v706_v40, %v2700_v50 }
 0x173   : > { %v634_v51 = vsub.f32 %v2778_v38, %v2786_v31  ;;  %v2797_v53 = vmin.f32 %v648_v45, %v2702_v61  ;;  %v2803_v3 = vmin.f32 %v648_v45, %v2700_v50  ;;  %v796_v5 = vadd.f32 1.0, %v780_v63  ;;  %v2886_v63 = vpop.permute.xlu1 %590 }
 0x174   : > { %v2876_v35 = vmin.f32 %v706_v40, %v2702_v61  ;;  %v2881_v22 = vmin.f32 %v708_v4, %v2700_v50  ;;  %v2884_v36 = vmin.f32 %v710_v20, %v2700_v50  ;;  %v256_v41 = vmul.f32 1.442695, %v244_v42  ;;  %v241_v42 = vld [vmem:[%s2830_s6] sm:$0x1] }
 0x175   : > { %v650_v30 = vmax.f32 %v634_v51, 0.0  ;;  %3958 = vst [vmem:[#allocation25_spill] sm:$0xff] %v2803_v3  ;;  %1034 = vperm.xlu0 %2211, %v2797_v53   ;;  %954 = vperm.xlu1 %2209, %v2803_v3   ;;  %v243_v51 = vld [vmem:[%s2830_s6 + $0x2] sm:$0x1]  ;;  %v798_v2 = vadd.f32 1.0, %v782_v52  ;;  %v784_v40 = vsub.f32 %v2852_v34, %v2734_v12  ;;  %v625_v3 = vsub.f32 %v2862_v9, %v2799_v25 }
 0x176   : > { %v253_v56 = vmul.f32 1.442695, %v243_v51  ;;  %v2904_v52 = vadd.f32 %v2640_v39, %v371_v37  ;;  %v2907_v51 = vmin.f32 %v708_v4, %v2702_v61  ;;  %v786_v39 = vsub.f32 %v2876_v35, %v2747_v46 }
 0x177   : > { %v2809_v11 = vmin.f32 %v650_v30, %v2702_v61  ;;  %v2812_v17 = vmin.f32 %v650_v30, %v2700_v50  ;;  %v623_v30 = vsub.f32 %v2835_v18, %v2771_v29  ;;  %v2923_v37 = vmax.f32 %v625_v3, 0.0 }
 0x178   : > { %2248 = vpow2.f32 %v253_v56  ;;  %v2915_v56 = vadd.f32 %v2764_v58, %v2767_v33  ;;  %v2931_v33 = vpop.permute.xlu1 %594 }
 0x179   : > { %3959 = vst [vmem:[#allocation26_spill] sm:$0xff] %v2812_v17  ;;  %1044 = vperm.xlu0 %2211, %v2809_v11   ;;  %964 = vperm.xlu1 %2209, %v2812_v17   ;;  %v2894_v17 = vmax.f32 %v623_v30, 0.0  ;;  %2250 = vpow2.f32 %v256_v41  ;;  %v800_v41 = vadd.f32 1.0, %v784_v40  ;;  %v802_v40 = vadd.f32 1.0, %v786_v39  ;;  %v246_v39 = vld [vmem:[%s2830_s6 + $0x5] sm:$0x1] }
 0x17a   : > { %v3927_v3 = vmax.f32 %v2915_v56, 0.0  ;;  %v788_v30 = vsub.f32 %v2907_v51, %v2759_v27 }
 0x17b   : > { %v2929_v58 = vmin.f32 %v2894_v17, %v2702_v61 }
 0x17d   : > { %828 = vrot.lane.b32.xlu0 %v796_v5, %s2377_s7  ;;  %2210 = vset.pattern.permute.xlu1 %v3961_v6 }
 0x17e   : > { %974 = vperm.xlu1 %2210, %v668_v55   ;;  %v804_v55 = vadd.f32 1.0, %v788_v30  ;;  %v3964_v30 = vld [vmem:[#allocation15_spill] sm:$0xff] }
 0x17f   : > { %v379_v28 = vmul.f32 %v3964_v30, %v2540_v14 }
 0x181   : > { %832 = vrot.lane.b32.xlu0 %v798_v2, %s2377_s7  ;;  %v627_v2 = vsub.f32 %v2904_v52, %v2840_v7 }
 0x182   : > { %984 = vperm.xlu1 %2210, %v670_v21   ;;  %v373_v21 = vmul.f32 %v2611_v24, %v2516_v8  ;;  %v2939_v8 = vadd.f32 %v2786_v31, %v2778_v38  ;;  %v2943_v24 = vmin.f32 %v710_v20, %v2702_v61  ;;  %v2958_v31 = vmin.f32 %v2923_v37, %v2702_v61  ;;  %v242_v20 = vld [vmem:[%s2830_s6 + $0x1] sm:$0x1] }
 0x183   : > { %v251_v4 = vmul.f32 %v246_v39, %v242_v20  ;;  %v3965_v20 = vld [vmem:[#allocation16_spill] sm:$0xff] }
 0x184   : > { %v2935_v46 = vadd.f32 %v2646_v43, %v373_v21  ;;  %v375_v43 = vmul.f32 %v2615_v26, %v2524_v10  ;;  %v2952_v21 = vmax.f32 %v627_v2, 0.0  ;;  %v2968_v26 = vpop.permute.xlu1 %598  ;;  %v2973_v2 = vmin.f32 %v3927_v3, %v2702_v61  ;;  %v248_v3 = vld [vmem:[%s2830_s6 + $0x7] sm:$0x1] }
 0x185   : > { %836 = vrot.lane.b32.xlu0 %v800_v41, %s2377_s7  ;;  %v245_v41 = vld [vmem:[%s2830_s6 + $0x4] sm:$0x1]  ;;  %v790_v45 = vsub.f32 %v2943_v24, %v2781_v23  ;;  %v2249_v19 = vpop.eup %2248  ;;  %v252_v30 = vadd.f32 %v251_v4, %v248_v3 }
 0x186   : > { %989 = vperm.xlu1 %2210, %v2929_v58   ;;  %v629_v38 = vsub.f32 %v2935_v46, %v2886_v63  ;;  %v2964_v27 = vadd.f32 %v2652_v47, %v375_v43  ;;  %v249_v10 = vmul.f32 %v245_v41, %v241_v42  ;;  %v3962_v47 = vld [vmem:[#allocation13_spill] sm:$0xff]  ;;  %v3963_v43 = vld [vmem:[#allocation14_spill] sm:$0xff]  ;;  %v2986_v15 = vmin.f32 %v2952_v21, %v2702_v61  ;;  %v2251_v23 = vpop.eup %2250 }
 0x187   : > { %v377_v5 = vmul.f32 %v3963_v43, %v3962_v47  ;;  %v255_v57 = vmul.f32 %v2249_v19, %v245_v41  ;;  %v806_v54 = vadd.f32 1.0, %v790_v45  ;;  %v792_v14 = vsub.f32 %v2973_v2, %v2797_v53  ;;  %v3967_v45 = vld [vmem:[#allocation17_spill] sm:$0xff] }
 0x188   : > { %v2980_v12 = vmax.f32 %v629_v38, 0.0  ;;  %v631_v42 = vsub.f32 %v2964_v27, %v2931_v33  ;;  %v3966_v38 = vmax.f32 %v2939_v8, 0.0  ;;  %v3011_v49 = vpop.permute.xlu1 %602  ;;  %v3015_v41 = vadd.f32 %v3967_v45, %v379_v28 }
 0x189   : > { %840 = vrot.lane.b32.xlu0 %v802_v40, %s2377_s7  ;;  %v247_v40 = vld [vmem:[%s2830_s6 + $0x6] sm:$0x1]  ;;  %v2993_v62 = vadd.f32 %v3965_v20, %v377_v5  ;;  %v808_v4 = vadd.f32 1.0, %v792_v14 }
 0x18a   : > { %999 = vperm.xlu1 %2210, %v2958_v31   ;;  %v2998_v47 = vmin.f32 %v3966_v38, %v2702_v61  ;;  %v250_v43 = vadd.f32 %v249_v10, %v247_v40  ;;  %v3003_v59 = vmax.f32 %v631_v42, 0.0  ;;  %v3009_v20 = vmin.f32 %v2980_v12, %v2702_v61 }
 0x18b   : > { %v633_v5 = vsub.f32 %v2993_v62, %v2968_v26  ;;  %v259_v38 = vmul.f32 0.5, %v255_v57  ;;  %v635_v57 = vsub.f32 %v3015_v41, %v3011_v49 }
 0x18c   : > { %v794_v3 = vsub.f32 %v2998_v47, %v2809_v11 }
 0x18d   : > { %844 = vrot.lane.b32.xlu0 %v804_v55, %s2377_s7  ;;  %v258_v55 = vmul.f32 %v2251_v23, %v246_v39  ;;  %v260_v53 = vsub.f32 %v250_v43, %v259_v38  ;;  %v3021_v10 = vmax.f32 %v633_v5, 0.0  ;;  %v3037_v14 = vmax.f32 %v635_v57, 0.0 }
 0x18e   : > { %1009 = vperm.xlu1 %2210, %v2986_v15   ;;  %v810_v11 = vadd.f32 1.0, %v794_v3 }
 0x18f   : > { %v264_v19 = vmul.f32 0.5, %v258_v55  ;;  %v261_v28 = vmax.f32 %v260_v53, 0.0  ;;  %v3041_v55 = vmin.f32 %v3021_v10, %v2702_v61  ;;  %v3053_v53 = vmin.f32 %v3037_v14, %v2702_v61 }
 0x191   : > { %848 = vrot.lane.b32.xlu0 %v806_v54, %s2377_s7  ;;  %v265_v39 = vsub.f32 %v252_v30, %v264_v19  ;;  %v3027_v54 = vmin.f32 %v3003_v59, %v2702_v61  ;;  %v3032_v42 = vmin.f32 %v261_v28, %v2700_v50  ;;  %v272_v5 = vadd.f32 %v264_v19, %v252_v30 }
 0x192   : > { %1019 = vperm.xlu1 %2210, %v3009_v20   ;;  %v3971_v30 = vmov 0   ;;  %v269_v19 = vadd.f32 %v259_v38, %v250_v43  ;;  %v3147_v38 = vadd.f32 %v2968_v26, %v2993_v62  ;;  %v3163_v62 = vadd.f32 %v3011_v49, %v3015_v41 }
 0x193   : > { %v266_v40 = vmax.f32 %v265_v39, 0.0  ;;  %3968 = vst [vmem:[#allocation13_spill] sm:$0xff] %v3032_v42  ;;  %275 = vst [vmem:[%s3043_s9] sm:$0x1] %v3032_v42  ;;  %v273_v45 = vmax.f32 %v272_v5, 0.0 }
 0x194   : > { %v270_v3 = vmax.f32 %v269_v19, 0.0  ;;  %v715_v5 = vmax.f32 %v3163_v62, 0.0 }
 0x195   : > { %852 = vrot.lane.b32.xlu0 %v808_v4, %s2377_s7  ;;  %v3035_v23 = vmin.f32 %v266_v40, %v2702_v61  ;;  %v3056_v4 = vmin.f32 %v273_v45, %v2702_v61  ;;  %v713_v40 = vmax.f32 %v3147_v38, 0.0  ;;  %v3976_v38 = vld [vmem:[#allocation24_spill] sm:$0xff] }
 0x196   : > { %1029 = vperm.xlu1 %2210, %v3027_v54   ;;  %v3068_v39 = vmin.f32 %v270_v3, %v2700_v50 }
 0x197   : > { %3969 = vst [vmem:[#allocation14_spill] sm:$0xff] %v3035_v23  ;;  %276 = vst [vmem:[%s3043_s9 + $0x1] sm:$0x1] %v3035_v23 }
 0x198   : > { %3970 = vst [vmem:[#allocation15_spill] sm:$0xff] %v3056_v4  ;;  %278 = vst [vmem:[%s3043_s9 + $0x3] sm:$0x1] %v3056_v4 }
 0x199   : > { %856 = vrot.lane.b32.xlu0 %v810_v11, %s2377_s7  ;;  %3972 = vst [vmem:[#allocation16_spill] sm:$0xff] %v3068_v39  ;;  %277 = vst [vmem:[%s3043_s9 + $0x2] sm:$0x1] %v3068_v39  ;;  %v3174_v11 = vmin.f32 %v713_v40, %v2702_v61 }
 0x19a   : > { %1039 = vperm.xlu1 %2210, %v3041_v55  }
 0x19b   : > { %v793_v19 = vsub.f32 %v3174_v11, %v3041_v55 }
 0x19d   : > { %1139 = vperm.xlu0 %2211, %v2819_v13   ;;  %v809_v3 = vadd.f32 1.0, %v793_v19 }
 0x19e   : > { %1049 = vperm.xlu1 %2210, %v3053_v53  }
 0x1a1   : > { %1154 = vperm.xlu0 %2211, %v2852_v34   ;;  %v3076_v34 = vadd.f32 %v2771_v29, %v2835_v18  ;;  %v3095_v18 = vadd.f32 %v2840_v7, %v2904_v52  ;;  %v3973_v7 = vsub.f32 %v2819_v13, %v2716_v0 }
 0x1a2   : > { %2212 = vset.pattern.permute.xlu1 %v3971_v30 }
 0x1a3   : > { %1059 = vperm.xlu1 %2212, %v2870_v48   ;;  %v703_v43 = vmax.f32 %v3076_v34, 0.0  ;;  %v797_v52 = vadd.f32 1.0, %v3973_v7 }
 0x1a5   : > { %1164 = vperm.xlu0 %2211, %v2876_v35   ;;  %v3082_v35 = vadd.f32 %v2799_v25, %v2862_v9  ;;  %v3091_v29 = vmin.f32 %v703_v43, %v2702_v61  ;;  %v707_v9 = vmax.f32 %v3095_v18, 0.0 }
 0x1a7   : > { %1064 = vperm.xlu1 %2212, %v2848_v60  }
 0x1a9   : > { %1174 = vperm.xlu0 %2211, %v2907_v51   ;;  %v705_v51 = vmax.f32 %v3082_v35, 0.0 }
 0x1ab   : > { %1074 = vperm.xlu1 %2212, %v2867_v1   ;;  %v3102_v25 = vmin.f32 %v705_v51, %v2702_v61 }
 0x1ad   : > { %1184 = vperm.xlu0 %2211, %v2943_v24   ;;  %v3107_v24 = vadd.f32 %v2886_v63, %v2935_v46  ;;  %v3123_v63 = vadd.f32 %v2931_v33, %v2964_v27  ;;  %v785_v46 = vsub.f32 %v3102_v25, %v2958_v31 }
 0x1af   : > { %1084 = vperm.xlu1 %2212, %v2873_v32   ;;  %v709_v0 = vmax.f32 %v3107_v24, 0.0  ;;  %v711_v33 = vmax.f32 %v3123_v63, 0.0  ;;  %v801_v31 = vadd.f32 1.0, %v785_v46  ;;  %v3975_v63 = vmax.f32 %v2939_v8, 0.0 }
 0x1b0   : > { %v3236_v46 = vmin.f32 %v705_v51, %v2700_v50  ;;  %v3245_v8 = vmin.f32 %v707_v9, %v2700_v50  ;;  %v3274_v24 = vmin.f32 %v713_v40, %v2700_v50  ;;  %v3978_v40 = vsub.f32 %v2845_v44, %v2838_v16 }
 0x1b1   : > { %1194 = vperm.xlu0 %2211, %v2973_v2   ;;  %v783_v2 = vsub.f32 %v3091_v29, %v2929_v58  ;;  %v3128_v58 = vmin.f32 %v707_v9, %v2702_v61  ;;  %v3143_v27 = vmin.f32 %v709_v0, %v2702_v61  ;;  %v3158_v28 = vmin.f32 %v711_v33, %v2702_v61 }
 0x1b2   : > { %v3256_v35 = vmin.f32 %v709_v0, %v2700_v50  ;;  %v3265_v9 = vmin.f32 %v711_v33, %v2700_v50  ;;  %v3283_v33 = vmin.f32 %v715_v5, %v2700_v50 }
 0x1b3   : > { %1094 = vperm.xlu1 %2212, %v2881_v22   ;;  %v799_v13 = vadd.f32 1.0, %v783_v2  ;;  %v787_v57 = vsub.f32 %v3128_v58, %v2986_v15  ;;  %v789_v15 = vsub.f32 %v3143_v27, %v3009_v20  ;;  %v791_v49 = vsub.f32 %v3158_v28, %v3027_v54 }
 0x1b4   : > { %v3183_v20 = vmin.f32 %v3003_v59, %v2700_v50  ;;  %v3194_v54 = vmin.f32 %v3021_v10, %v2700_v50  ;;  %v3974_v10 = vmax.f32 %v2915_v56, 0.0 }
 0x1b5   : > { %1204 = vperm.xlu0 %2211, %v2998_v47   ;;  %v3119_v47 = vmin.f32 %v2894_v17, %v2700_v50  ;;  %v3137_v17 = vmin.f32 %v2923_v37, %v2700_v50  ;;  %v3155_v37 = vmin.f32 %v2952_v21, %v2700_v50  ;;  %v803_v26 = vadd.f32 1.0, %v787_v57 }
 0x1b6   : > { %v3171_v21 = vmin.f32 %v2980_v12, %v2700_v50  ;;  %v805_v45 = vadd.f32 1.0, %v789_v15  ;;  %v3186_v12 = vmin.f32 %v715_v5, %v2702_v61  ;;  %v807_v41 = vadd.f32 1.0, %v791_v49 }
 0x1b7   : > { %1104 = vperm.xlu1 %2212, %v2884_v36   ;;  %v3202_v61 = vmin.f32 %v3037_v14, %v2700_v50  ;;  %v3211_v7 = vmin.f32 %v3974_v10, %v2700_v50  ;;  %v3220_v14 = vmin.f32 %v703_v43, %v2700_v50 }
 0x1b8   : > { %v795_v59 = vsub.f32 %v3186_v12, %v3053_v53 }
 0x1b9   : > { %2214 = vset.pattern.permute.xlu0 %v3971_v30 }
 0x1ba   : > { %894 = vperm.xlu0 %2214, %v2838_v16   ;;  %v811_v55 = vadd.f32 1.0, %v795_v59 }
 0x1bb   : > { %830 = vrot.lane.b32.xlu1 %v797_v52, %s2377_s7 }
 0x1be   : > { %909 = vperm.xlu0 %2214, %v3119_v47  }
 0x1bf   : > { %834 = vrot.lane.b32.xlu1 %v799_v13, %s2377_s7  ;;  %v3227_v13 = vmin.f32 %v3975_v63, %v2700_v50 }
 0x1c2   : > { %919 = vperm.xlu0 %2214, %v3137_v17  }
 0x1c3   : > { %838 = vrot.lane.b32.xlu1 %v801_v31, %s2377_s7 }
 0x1c6   : > { %929 = vperm.xlu0 %2214, %v3155_v37  }
 0x1c7   : > { %842 = vrot.lane.b32.xlu1 %v803_v26, %s2377_s7 }
 0x1ca   : > { %939 = vperm.xlu0 %2214, %v3171_v21  }
 0x1cb   : > { %846 = vrot.lane.b32.xlu1 %v805_v45, %s2377_s7  ;;  %v764_v45 = vadd.f32 1.0, %v3978_v40 }
 0x1ce   : > { %949 = vperm.xlu0 %2214, %v3183_v20  }
 0x1cf   : > { %850 = vrot.lane.b32.xlu1 %v807_v41, %s2377_s7 }
 0x1d2   : > { %959 = vperm.xlu0 %2214, %v3194_v54  }
 0x1d3   : > { %854 = vrot.lane.b32.xlu1 %v809_v3, %s2377_s7 }
 0x1d6   : > { %969 = vperm.xlu0 %2214, %v3202_v61  }
 0x1d7   : > { %858 = vrot.lane.b32.xlu1 %v811_v55, %s2377_s7 }
 0x1d8   : > { %v3206_v2 = vpop.permute.xlu1 %899  ;;  %v3214_v53 = vpop.permute.xlu0 %979 }
 0x1da   : > { %1054 = vperm.xlu0 %2214, %v2845_v44  }
 0x1db   : > { %1114 = vperm.xlu1 %2212, %v3211_v7  }
 0x1dc   : > { %v3222_v52 = vpop.permute.xlu1 %904 }
 0x1de   : > { %1069 = vperm.xlu0 %2214, %v3220_v14  }
 0x1df   : > { %1124 = vperm.xlu1 %2212, %v3227_v13  }
 0x1e0   : > { %v3231_v56 = vpop.permute.xlu0 %994  ;;  %v3238_v34 = vpop.permute.xlu1 %914 }
 0x1e2   : > { %1079 = vperm.xlu0 %2214, %v3236_v46  }
 0x1e3   : > { %2213 = vset.pattern.permute.xlu1 %v3961_v6  ;;  %v3977_v6 = vld [vmem:[#allocation27_spill] sm:$0xff] }
 0x1e4   : > { %v3247_v43 = vpop.permute.xlu1 %924  ;;  %1134 = vperm.xlu1 %2213, %v3976_v38   ;;  %v3250_v31 = vpop.permute.xlu0 %1004 }
 0x1e6   : > { %1089 = vperm.xlu0 %2214, %v3245_v8  }
 0x1e8   : > { %v3258_v51 = vpop.permute.xlu1 %934  ;;  %1144 = vperm.xlu1 %2213, %v3977_v6   ;;  %v3261_v18 = vpop.permute.xlu0 %1014 }
 0x1ea   : > { %1099 = vperm.xlu0 %2214, %v3256_v35  }
 0x1ec   : > { %v3267_v57 = vpop.permute.xlu1 %944  ;;  %1149 = vperm.xlu1 %2213, %v3091_v29   ;;  %v3270_v62 = vpop.permute.xlu0 %1024 }
 0x1ee   : > { %1109 = vperm.xlu0 %2214, %v3265_v9  }
 0x1f0   : > { %v3276_v0 = vpop.permute.xlu1 %954  ;;  %1159 = vperm.xlu1 %2213, %v3102_v25   ;;  %v3279_v26 = vpop.permute.xlu0 %1034 }
 0x1f2   : > { %1119 = vperm.xlu0 %2214, %v3274_v24  }
 0x1f4   : > { %1169 = vperm.xlu1 %2213, %v3128_v58   ;;  %v3286_v29 = vpop.permute.xlu1 %964  ;;  %v3288_v15 = vpop.permute.xlu0 %1044 }
 0x1f6   : > { %1129 = vperm.xlu0 %2214, %v3283_v33  }
 0x1f8   : > { %1179 = vperm.xlu1 %2213, %v3143_v27   ;;  %v829_v25 = vpop.permute.xlu0 %828 }
 0x1f9   : > { %v876_v49 = vmul.f32 %v829_v25, %v764_v45  ;;  %v3295_v41 = vpop.permute.xlu1 %974 }
 0x1fa   : > { %3979 = vst [vmem:[#allocation17_spill] sm:$0xff] %v3295_v41 }
 0x1fb   : > { %1214 = vperm.xlu0 %2214, %v876_v49  }
 0x1fc   : > { %1189 = vperm.xlu1 %2213, %v3158_v28   ;;  %v3298_v50 = vpop.permute.xlu0 %832  ;;  %v3935_v28 = vlaneseq }
 0x1fd   : > { %v3300_v58 = vpop.permute.xlu1 %984 }
 0x200   : > { %1199 = vperm.xlu1 %2213, %v3174_v11   ;;  %v3303_v5 = vpop.permute.xlu0 %836  ;;  %v3320_v11 = vshrl.u32 %v3935_v28, 7 }
 0x201   : > { %v3305_v19 = vpop.permute.xlu1 %989 }
 0x202   : > { %3980 = vst [vmem:[#allocation24_spill] sm:$0xff] %v3305_v19  ;;  %3983 = vst [vmem:[#allocation29_spill] sm:$0xff] %v3320_v11 }
 0x204   : > { %1209 = vperm.xlu1 %2213, %v3186_v12   ;;  %v3308_v16 = vpop.permute.xlu0 %840  ;;  %v3327_v12 = vsub.s32 0, %v3320_v11 }
 0x205   : > { %v3310_v44 = vpop.permute.xlu1 %999 }
 0x206   : > { %3981 = vst [vmem:[#allocation27_spill] sm:$0xff] %v3310_v44  ;;  %3985 = vst [vmem:[#allocation31_spill] sm:$0xff] %v3327_v12  ;;  %v3341_v40 = vrot.slane %v3056_v4, %v3327_v12  ;;  %v3350_v11 = vrot.slane %v3032_v42, %v3327_v12 }
 0x208   : > { %v3312_v27 = vpop.permute.xlu0 %844  ;;  %2215 = vset.pattern.permute.xlu1 %v3971_v30  ;;  %v3335_v30 = vrot.slane %v3035_v23, %v3327_v12 }
 0x209   : > { %v3315_v3 = vpop.permute.xlu1 %1009 }
 0x20a   : > { %3982 = vst [vmem:[#allocation28_spill] sm:$0xff] %v3315_v3  ;;  %v1405_v25 = vmax.f32 %v3214_v53, %v3335_v30  ;;  %v1408_v3 = vmax.f32 %v3231_v56, %v3335_v30  ;;  %v1318_v56 = vmax.f32 %v3222_v52, %v3350_v11 }
 0x20c   : > { %v3317_v59 = vpop.permute.xlu0 %848 }
 0x20d   : > { %v3322_v55 = vpop.permute.xlu1 %1019 }
 0x20e   : > { %3984 = vst [vmem:[#allocation30_spill] sm:$0xff] %v3322_v55 }
 0x210   : > { %v3324_v10 = vpop.permute.xlu0 %852 }
 0x211   : > { %v3329_v63 = vpop.permute.xlu1 %1029 }
 0x212   : > { %3986 = vst [vmem:[#allocation32_spill] sm:$0xff] %v3329_v63 }
 0x214   : > { %v3331_v38 = vpop.permute.xlu0 %856 }
 0x215   : > { %v3337_v6 = vpop.permute.xlu1 %1039 }
 0x216   : > { %3987 = vst [vmem:[#allocation33_spill] sm:$0xff] %v3337_v6  ;;  %v3354_v6 = vrot.slane %v3068_v39, %v3327_v12 }
 0x218   : > { %v1140_v45 = vpop.permute.xlu0 %1139 }
 0x219   : > { %v1385_v49 = vmin.f32 %v1140_v45, %v3341_v40  ;;  %v3346_v28 = vpop.permute.xlu1 %1049  ;;  %v1317_v45 = vmax.f32 %v3206_v2, %v3350_v11 }
 0x21a   : > { %3988 = vst [vmem:[#allocation34_spill] sm:$0xff] %v3346_v28 }
 0x21b   : > { %v1421_v63 = vsub.f32 %v1385_v49, %v1405_v25  ;;  %v1410_v25 = vmax.f32 %v3250_v31, %v3335_v30 }
 0x21c   : > { %v1155_v55 = vpop.permute.xlu0 %1154 }
 0x21d   : > { %v1388_v44 = vmin.f32 %v1155_v55, %v3341_v40  ;;  %v1437_v4 = vadd.f32 1.0, %v1421_v63  ;;  %v1320_v63 = vmax.f32 %v3238_v34, %v3350_v11 }
 0x21e   : > { %v1060_v53 = vpop.permute.xlu1 %1059 }
 0x21f   : > { %v1424_v28 = vsub.f32 %v1388_v44, %v1408_v3  ;;  %v1297_v41 = vmin.f32 %v1060_v53, %v3354_v6  ;;  %v1412_v44 = vmax.f32 %v3261_v18, %v3335_v30 }
 0x220   : > { %v1165_v19 = vpop.permute.xlu0 %1164 }
 0x221   : > { %v1333_v49 = vsub.f32 %v1297_v41, %v1317_v45  ;;  %v1390_v12 = vmin.f32 %v1165_v19, %v3341_v40  ;;  %v1453_v41 = vmax.f32 %v1437_v4, 0.0  ;;  %v1322_v4 = vmax.f32 %v3247_v43, %v3350_v11 }
 0x222   : > { %v1065_v23 = vpop.permute.xlu1 %1064 }
 0x223   : > { %v1349_v55 = vadd.f32 1.0, %v1333_v49  ;;  %v1426_v39 = vsub.f32 %v1390_v12, %v1410_v25  ;;  %v1298_v42 = vmin.f32 %v1065_v23, %v3354_v6  ;;  %v1414_v23 = vmax.f32 %v3270_v62, %v3335_v30 }
 0x224   : > { %v1175_v2 = vpop.permute.xlu0 %1174  ;;  %v1440_v49 = vadd.f32 1.0, %v1424_v28  ;;  %v1324_v28 = vmax.f32 %v3258_v51, %v3350_v11  ;;  %v1326_v51 = vmax.f32 %v3267_v57, %v3350_v11 }
 0x225   : > { %v1365_v3 = vmax.f32 %v1349_v55, 0.0  ;;  %v3370_v53 = vsub.f32 %v1298_v42, %v1318_v56  ;;  %v1392_v31 = vmin.f32 %v1175_v2, %v3341_v40 }
 0x226   : > { %v1075_v19 = vpop.permute.xlu1 %1074 }
 0x227   : > { %v1428_v45 = vsub.f32 %v1392_v31, %v1412_v44  ;;  %v1300_v52 = vmin.f32 %v1075_v19, %v3354_v6  ;;  %v3376_v25 = vmul.f32 %v1453_v41, %v1365_v3  ;;  %v1416_v3 = vmax.f32 %v3279_v26, %v3335_v30 }
 0x228   : > { %v1185_v12 = vpop.permute.xlu0 %1184  ;;  %v1456_v19 = vmax.f32 %v1440_v49, 0.0 }
 0x229   : > { %v1336_v18 = vsub.f32 %v1300_v52, %v1320_v63  ;;  %v1394_v42 = vmin.f32 %v1185_v12, %v3341_v40  ;;  %v1442_v63 = vadd.f32 1.0, %v1426_v39 }
 0x22a   : > { %v1085_v56 = vpop.permute.xlu1 %1084 }
 0x22b   : > { %v1352_v55 = vadd.f32 1.0, %v1336_v18  ;;  %v1430_v2 = vsub.f32 %v1394_v42, %v1414_v23  ;;  %v1302_v34 = vmin.f32 %v1085_v56, %v3354_v6  ;;  %v1418_v18 = vmax.f32 %v3288_v15, %v3335_v30  ;;  %v3989_v15 = vld [vmem:[#allocation18_spill] sm:$0xff] }
 0x22c   : > { %v1195_v44 = vpop.permute.xlu0 %1194  ;;  %v1444_v56 = vadd.f32 1.0, %v1428_v45  ;;  %v1458_v49 = vmax.f32 %v1442_v63, 0.0  ;;  %v751_v45 = vsub.f32 %v3220_v14, %v3119_v47 }
 0x22d   : > { %v1368_v31 = vmax.f32 %v1352_v55, 0.0  ;;  %v1338_v41 = vsub.f32 %v1302_v34, %v1322_v4  ;;  %v1396_v62 = vmin.f32 %v1195_v44, %v3341_v40  ;;  %v1446_v63 = vadd.f32 1.0, %v1430_v2 }
 0x22e   : > { %v1095_v52 = vpop.permute.xlu1 %1094  ;;  %v767_v14 = vadd.f32 1.0, %v751_v45  ;;  %v753_v2 = vsub.f32 %v3236_v46, %v3137_v17  ;;  %v755_v45 = vsub.f32 %v3245_v8, %v3155_v37  ;;  %v3997_v8 = vld [vmem:[#allocation22_spill] sm:$0xff] }
 0x22f   : > { %v1354_v12 = vadd.f32 1.0, %v1338_v41  ;;  %v3389_v43 = vsub.f32 %v1396_v62, %v1416_v3  ;;  %v1304_v23 = vmin.f32 %v1095_v52, %v3354_v6  ;;  %v3394_v26 = vmul.f32 %v1456_v19, %v1368_v31 }
 0x230   : > { %v1205_v42 = vpop.permute.xlu0 %1204  ;;  %v3990_v62 = vsub.f32 %v2870_v48, %v3989_v15  ;;  %v1460_v52 = vmax.f32 %v1444_v56, 0.0  ;;  %v1462_v15 = vmax.f32 %v1446_v63, 0.0 }
 0x231   : > { %v1370_v4 = vmax.f32 %v1354_v12, 0.0  ;;  %v1340_v55 = vsub.f32 %v1304_v23, %v1324_v28  ;;  %v1398_v39 = vmin.f32 %v1205_v42, %v3341_v40 }
 0x232   : > { %v1105_v34 = vpop.permute.xlu1 %1104  ;;  %v765_v31 = vadd.f32 1.0, %v3990_v62 }
 0x233   : > { %v1356_v44 = vadd.f32 1.0, %v1340_v55  ;;  %v3399_v3 = vsub.f32 %v1398_v39, %v1418_v18  ;;  %v1306_v41 = vmin.f32 %v1105_v34, %v3354_v6  ;;  %v3407_v19 = vmul.f32 %v1458_v49, %v1370_v4  ;;  %v3991_v39 = vld [vmem:[#allocation19_spill] sm:$0xff] }
 0x234   : > { %v3992_v48 = vsub.f32 %v2848_v60, %v3991_v39 }
 0x235   : > { %v1372_v28 = vmax.f32 %v1356_v44, 0.0  ;;  %v1342_v12 = vsub.f32 %v1306_v41, %v1326_v51  ;;  %v3409_v23 = vpop.permute.xlu0 %894  ;;  %v3993_v44 = vld [vmem:[#allocation20_spill] sm:$0xff] }
 0x236   : > { %v831_v57 = vpop.permute.xlu1 %830  ;;  %v766_v34 = vadd.f32 1.0, %v3992_v48  ;;  %v3994_v41 = vsub.f32 %v2867_v1, %v3993_v44  ;;  %v761_v44 = vsub.f32 %v3274_v24, %v3194_v54 }
 0x237   : > { %v1358_v18 = vadd.f32 1.0, %v1342_v12  ;;  %v877_v42 = vmul.f32 %v831_v57, %v765_v31  ;;  %v3411_v55 = vmul.f32 %v1460_v52, %v1372_v28  ;;  %v769_v52 = vadd.f32 1.0, %v753_v2 }
 0x238   : > { %v878_v4 = vmul.f32 %v3298_v50, %v766_v34  ;;  %v768_v60 = vadd.f32 1.0, %v3994_v41  ;;  %v3995_v50 = vld [vmem:[#allocation21_spill] sm:$0xff]  ;;  %v771_v57 = vadd.f32 1.0, %v755_v45  ;;  %v763_v45 = vsub.f32 %v3283_v33, %v3202_v61 }
 0x239   : > { %v1374_v62 = vmax.f32 %v1358_v18, 0.0  ;;  %1219 = vperm.xlu1 %2215, %v877_v42   ;;  %v3416_v47 = vpop.permute.xlu0 %909  ;;  %v3996_v28 = vsub.f32 %v2873_v32, %v3995_v50  ;;  %v757_v18 = vsub.f32 %v3256_v35, %v3171_v21  ;;  %v3999_v35 = vld [vmem:[#allocation23_spill] sm:$0xff]  ;;  %v1328_v61 = vmax.f32 %v3276_v0, %v3350_v11 }
 0x23a   : > { %v835_v56 = vpop.permute.xlu1 %834  ;;  %v880_v17 = vmul.f32 %v3303_v5, %v768_v60  ;;  %v3998_v5 = vsub.f32 %v2881_v22, %v3997_v8  ;;  %v4002_v60 = vld [vmem:[#allocation26_spill] sm:$0xff]  ;;  %v1330_v8 = vmax.f32 %v3286_v29, %v3350_v11 }
 0x23b   : > { %v879_v49 = vmul.f32 %v835_v56, %v767_v14  ;;  %v3421_v51 = vmul.f32 %v1462_v15, %v1374_v62  ;;  %v770_v12 = vadd.f32 1.0, %v3996_v28  ;;  %v773_v34 = vadd.f32 1.0, %v757_v18  ;;  %v4001_v56 = vld [vmem:[#allocation25_spill] sm:$0xff] }
 0x23c   : > { %v772_v48 = vadd.f32 1.0, %v3998_v5  ;;  %v759_v15 = vsub.f32 %v3265_v9, %v3183_v20  ;;  %v760_v22 = vsub.f32 %v3211_v7, %v4001_v56  ;;  %v777_v7 = vadd.f32 1.0, %v761_v44 }
 0x23d   : > { %1229 = vperm.xlu0 %2214, %v879_v49   ;;  %1224 = vperm.xlu1 %2215, %v878_v4   ;;  %v3426_v31 = vpop.permute.xlu0 %919  ;;  %v882_v39 = vmul.f32 %v3308_v16, %v770_v12  ;;  %v4000_v16 = vsub.f32 %v2884_v36, %v3999_v35  ;;  %v762_v36 = vsub.f32 %v3227_v13, %v4002_v60 }
 0x23e   : > { %v839_v63 = vpop.permute.xlu1 %838  ;;  %v884_v14 = vmul.f32 %v3312_v27, %v772_v48  ;;  %v775_v49 = vadd.f32 1.0, %v759_v15  ;;  %v776_v41 = vadd.f32 1.0, %v760_v22  ;;  %v1450_v15 = vadd.f32 1.0, %v3399_v3 }
 0x23f   : > { %v881_v46 = vmul.f32 %v839_v63, %v769_v52  ;;  %v774_v2 = vadd.f32 1.0, %v4000_v16  ;;  %v778_v24 = vadd.f32 1.0, %v762_v36  ;;  %v4003_v36 = vld [vmem:[#allocation13_spill] sm:$0xff] }
 0x240   : > { %v1466_v56 = vmax.f32 %v1450_v15, 0.0  ;;  %v1316_v15 = vmax.f32 %v3409_v23, %v3350_v11 }
 0x241   : > { %1239 = vperm.xlu0 %2214, %v881_v46   ;;  %1234 = vperm.xlu1 %2215, %v880_v17   ;;  %v3434_v1 = vpop.permute.xlu0 %929  ;;  %v886_v9 = vmul.f32 %v3317_v59, %v774_v2  ;;  %v888_v17 = vmul.f32 %v3324_v10, %v776_v41  ;;  %v779_v46 = vadd.f32 1.0, %v763_v45  ;;  %v890_v13 = vmul.f32 %v3331_v38, %v778_v24 }
 0x242   : > { %v843_v42 = vpop.permute.xlu1 %842  ;;  %v1448_v10 = vadd.f32 1.0, %v3389_v43  ;;  %v1323_v44 = vmax.f32 %v3434_v1, %v3350_v11 }
 0x243   : > { %v883_v37 = vmul.f32 %v843_v42, %v771_v57 }
 0x244   : > { %v1464_v0 = vmax.f32 %v1448_v10, 0.0 }
 0x245   : > { %1249 = vperm.xlu0 %2214, %v883_v37   ;;  %1244 = vperm.xlu1 %2215, %v882_v39   ;;  %v3442_v32 = vpop.permute.xlu0 %939  ;;  %v1319_v39 = vmax.f32 %v3416_v47, %v3350_v11 }
 0x246   : > { %v847_v62 = vpop.permute.xlu1 %846  ;;  %v1325_v1 = vmax.f32 %v3442_v32, %v3350_v11 }
 0x247   : > { %v885_v21 = vmul.f32 %v847_v62, %v773_v34 }
 0x249   : > { %1259 = vperm.xlu0 %2214, %v885_v21   ;;  %1254 = vperm.xlu1 %2215, %v884_v14   ;;  %v3452_v4 = vpop.permute.xlu0 %949  ;;  %v1321_v21 = vmax.f32 %v3426_v31, %v3350_v11  ;;  %v1406_v31 = vmax.f32 %v3300_v58, %v3335_v30 }
 0x24a   : > { %v851_v20 = vpop.permute.xlu1 %850 }
 0x24b   : > { %v887_v27 = vmul.f32 %v851_v20, %v775_v49 }
 0x24d   : > { %1269 = vperm.xlu0 %2214, %v887_v27   ;;  %1264 = vperm.xlu1 %2215, %v886_v9   ;;  %v3459_v52 = vpop.permute.xlu0 %959 }
 0x24e   : > { %v855_v63 = vpop.permute.xlu1 %854 }
 0x24f   : > { %v889_v54 = vmul.f32 %v855_v63, %v777_v7  ;;  %v4004_v7 = vld [vmem:[#allocation16_spill] sm:$0xff]  ;;  %v4005_v63 = vld [vmem:[#allocation14_spill] sm:$0xff] }
 0x250   : > { %v279_v45 = vsub.f32 %v4004_v7, %v4003_v36  ;;  %v4010_v36 = vld [vmem:[#allocation28_spill] sm:$0xff] }
 0x251   : > { %1279 = vperm.xlu0 %2214, %v889_v54   ;;  %1274 = vperm.xlu1 %2215, %v888_v17   ;;  %v3464_v59 = vpop.permute.xlu0 %969  ;;  %v4006_v17 = vld [vmem:[#allocation15_spill] sm:$0xff]  ;;  %v1411_v7 = vmax.f32 %v4010_v36, %v3335_v30 }
 0x252   : > { %v859_v50 = vpop.permute.xlu1 %858  ;;  %v281_v54 = vsub.f32 %v4006_v17, %v4005_v63 }
 0x253   : > { %v891_v28 = vmul.f32 %v859_v50, %v779_v46  ;;  %v1350_v50 = vadd.f32 1.0, %v3370_v53  ;;  %v1327_v53 = vmax.f32 %v3452_v4, %v3350_v11 }
 0x255   : > { %1289 = vperm.xlu0 %2214, %v891_v28   ;;  %1284 = vperm.xlu1 %2215, %v890_v13   ;;  %v3467_v12 = vpop.permute.xlu0 %1054  ;;  %v4007_v28 = vld [vmem:[#allocation24_spill] sm:$0xff] }
 0x256   : > { %v1115_v57 = vpop.permute.xlu1 %1114  ;;  %v1296_v32 = vmin.f32 %v3467_v12, %v3354_v6 }
 0x257   : > { %v1308_v33 = vmin.f32 %v1115_v57, %v3354_v6  ;;  %v1407_v57 = vmax.f32 %v4007_v28, %v3335_v30 }
 0x259   : > { %v1344_v18 = vsub.f32 %v1308_v33, %v1328_v61  ;;  %v1070_v42 = vpop.permute.xlu0 %1069 }
 0x25a   : > { %v1299_v38 = vmin.f32 %v1070_v42, %v3354_v6  ;;  %v1125_v37 = vpop.permute.xlu1 %1124 }
 0x25b   : > { %v1360_v5 = vadd.f32 1.0, %v1344_v18  ;;  %v1310_v48 = vmin.f32 %v1125_v37, %v3354_v6  ;;  %v4008_v18 = vld [vmem:[#allocation17_spill] sm:$0xff]  ;;  %v282_v37 = vadd.f32 1.0, %v281_v54  ;;  %v1331_v54 = vmax.f32 %v3464_v59, %v3350_v11 }
 0x25c   : > { %v1335_v34 = vsub.f32 %v1299_v38, %v1319_v39  ;;  %v1404_v42 = vmax.f32 %v4008_v18, %v3335_v30  ;;  %v280_v38 = vadd.f32 1.0, %v279_v45  ;;  %v4012_v18 = vld [vmem:[#allocation30_spill] sm:$0xff] }
 0x25d   : > { %v1376_v62 = vmax.f32 %v1360_v5, 0.0  ;;  %v1346_v43 = vsub.f32 %v1310_v48, %v1330_v8  ;;  %v1080_v14 = vpop.permute.xlu0 %1079 }
 0x25e   : > { %v1301_v47 = vmin.f32 %v1080_v14, %v3354_v6 }
 0x25f   : > { %v1362_v35 = vadd.f32 1.0, %v1346_v43  ;;  %v1135_v16 = vpop.permute.xlu1 %1134  ;;  %v3483_v2 = vmul.f32 %v1464_v0, %v1376_v62  ;;  %v1366_v0 = vmax.f32 %v1350_v50, 0.0  ;;  %v1351_v62 = vadd.f32 1.0, %v1335_v34 }
 0x260   : > { %v1337_v29 = vsub.f32 %v1301_v47, %v1321_v21  ;;  %v1384_v58 = vmin.f32 %v1135_v16, %v3341_v40  ;;  %v4009_v21 = vld [vmem:[#allocation27_spill] sm:$0xff] }
 0x261   : > { %v1378_v22 = vmax.f32 %v1362_v35, 0.0  ;;  %v1090_v49 = vpop.permute.xlu0 %1089  ;;  %v1409_v12 = vmax.f32 %v4009_v21, %v3335_v30  ;;  %v1367_v34 = vmax.f32 %v1351_v62, 0.0 }
 0x262   : > { %v1303_v3 = vmin.f32 %v1090_v49, %v3354_v6  ;;  %v1420_v43 = vsub.f32 %v1384_v58, %v1404_v42  ;;  %v1329_v49 = vmax.f32 %v3459_v52, %v3350_v11  ;;  %v1413_v42 = vmax.f32 %v4012_v18, %v3335_v30 }
 0x263   : > { %v1145_v20 = vpop.permute.xlu1 %1144  ;;  %v3488_v9 = vmul.f32 %v1466_v56, %v1378_v22  ;;  %v1332_v56 = vsub.f32 %v1296_v32, %v1316_v15 }
 0x264   : > { %v1339_v27 = vsub.f32 %v1303_v3, %v1323_v44  ;;  %v1386_v41 = vmin.f32 %v1145_v20, %v3341_v40  ;;  %v1353_v20 = vadd.f32 1.0, %v1337_v29 }
 0x265   : > { %v1100_v60 = vpop.permute.xlu0 %1099  ;;  %v1348_v52 = vadd.f32 1.0, %v1332_v56 }
 0x266   : > { %v1422_v24 = vsub.f32 %v1386_v41, %v1406_v31  ;;  %v1305_v46 = vmin.f32 %v1100_v60, %v3354_v6  ;;  %v1436_v31 = vadd.f32 1.0, %v1420_v43  ;;  %v283_v60 = vmul.f32 %v282_v37, %v280_v38  ;;  %v4014_v43 = vld [vmem:[#allocation32_spill] sm:$0xff] }
 0x267   : > { %v1150_v13 = vpop.permute.xlu1 %1149 }
 0x268   : > { %v1438_v61 = vadd.f32 1.0, %v1422_v24  ;;  %v1341_v33 = vsub.f32 %v1305_v46, %v1325_v1  ;;  %v1387_v10 = vmin.f32 %v1150_v13, %v3341_v40  ;;  %v1355_v46 = vadd.f32 1.0, %v1339_v27 }
 0x269   : > { %v1110_v39 = vpop.permute.xlu0 %1109  ;;  %v1369_v13 = vmax.f32 %v1353_v20, 0.0  ;;  %v1452_v28 = vmax.f32 %v1436_v31, 0.0 }
 0x26a   : > { %v1454_v8 = vmax.f32 %v1438_v61, 0.0  ;;  %v1423_v5 = vsub.f32 %v1387_v10, %v1407_v57  ;;  %v1307_v48 = vmin.f32 %v1110_v39, %v3354_v6  ;;  %v4011_v61 = vld [vmem:[#allocation31_spill] sm:$0xff]  ;;  %v1364_v39 = vmax.f32 %v1348_v52, 0.0 }
 0x26b   : > { %v1160_v14 = vpop.permute.xlu1 %1159  ;;  %v3531_v10 = vrot.slane %v283_v60, %v4011_v61  ;;  %v1371_v27 = vmax.f32 %v1355_v46, 0.0  ;;  %v1357_v37 = vadd.f32 1.0, %v1341_v33  ;;  %v2378_v52 = vmov 0.0  }
 0x26c   : > { %v1439_v47 = vadd.f32 1.0, %v1423_v5  ;;  %v1343_v35 = vsub.f32 %v1307_v48, %v1327_v53  ;;  %v1389_v16 = vmin.f32 %v1160_v14, %v3341_v40  ;;  %v3517_v22 = vmul.f32 %v1454_v8, %v1366_v0 }
 0x26d   : > { %v1120_v4 = vpop.permute.xlu0 %1119  ;;  %v4013_v5 = vlaneseq  ;;  %v1468_v0 = vmul.f32 %v1452_v28, %v1364_v39  ;;  %v1415_v14 = vmax.f32 %v4014_v43, %v3335_v30  ;;  %v1373_v33 = vmax.f32 %v1357_v37, 0.0 }
 0x26e   : > { %v1455_v44 = vmax.f32 %v1439_v47, 0.0  ;;  %v1425_v3 = vsub.f32 %v1389_v16, %v1409_v12  ;;  %v1309_v23 = vmin.f32 %v1120_v4, %v3354_v6  ;;  %v1359_v56 = vadd.f32 1.0, %v1343_v35 }
 0x26f   : > { %v1170_v41 = vpop.permute.xlu1 %1169  ;;  %v3539_v48 = vand.u32 127, %v4013_v5 }
 0x270   : > { %v1441_v45 = vadd.f32 1.0, %v1425_v3  ;;  %v1345_v63 = vsub.f32 %v1309_v23, %v1329_v49  ;;  %v1391_v17 = vmin.f32 %v1170_v41, %v3341_v40  ;;  %v3527_v24 = vmul.f32 %v1455_v44, %v1367_v34  ;;  %v4015_v44 = vld [vmem:[#allocation29_spill] sm:$0xff] }
 0x271   : > { %v1130_v1 = vpop.permute.xlu0 %1129  ;;  %vm1571_vm0 = vcmp.lt.s32.totalorder %v3539_v48, %v4015_v44  ;;  %vm1652_vm1 = vcmp.lt.s32.totalorder %v4015_v44, %v3539_v48  ;;  %v4016_v34 = vld [vmem:[#allocation33_spill] sm:$0xff]  ;;  %v1375_v35 = vmax.f32 %v1359_v56, 0.0  ;;  %v1554_v39 = vadd.s32 8, %v4015_v44 }
 0x272   : > { %v1457_v50 = vmax.f32 %v1441_v45, 0.0  ;;  %v1427_v29 = vsub.f32 %v1391_v17, %v1411_v7  ;;  %v1311_v58 = vmin.f32 %v1130_v1, %v3354_v6  ;;  %v1417_v20 = vmax.f32 %v4016_v34, %v3335_v30  ;;  %v4017_v17 = vld [vmem:[#allocation34_spill] sm:$0xff] }
 0x273   : > { %v1180_v57 = vpop.permute.xlu1 %1179  ;;  %v1361_v36 = vadd.f32 1.0, %v1345_v63  ;;  %vm1572_vm5 = vcmp.lt.s32.totalorder %v3539_v48, %v1554_v39  ;;  %v3577_v5 = vadd.s32 32, %v4015_v44  ;;  %vm1653_vm6 = vcmp.lt.s32.totalorder %v1554_v39, %v3539_v48 }
 0x274   : > { %v1443_v32 = vadd.f32 1.0, %v1427_v29  ;;  %v1347_v11 = vsub.f32 %v1311_v58, %v1331_v54  ;;  %v1393_v59 = vmin.f32 %v1180_v57, %v3341_v40  ;;  %v3536_v38 = vmul.f32 %v1457_v50, %v1369_v13 }
 0x275   : > { %v1419_v54 = vmax.f32 %v4017_v17, %v3335_v30  ;;  %v1377_v13 = vmax.f32 %v1361_v36, 0.0  ;;  %vm1575_vm13 = vcmp.lt.s32.totalorder %v3539_v48, %v3577_v5  ;;  %vm1656_vm14 = vcmp.lt.s32.totalorder %v3577_v5, %v3539_v48 }
 0x276   : > { %v1459_v53 = vmax.f32 %v1443_v32, 0.0  ;;  %v1429_v6 = vsub.f32 %v1393_v59, %v1413_v42  ;;  %v1215_v8 = vpop.permute.xlu0 %1214  ;;  %v1363_v28 = vadd.f32 1.0, %v1347_v11 }
 0x277   : > { %v1488_v15 = vadd.f32 %v3531_v10, %v1215_v8  ;;  %v1190_v62 = vpop.permute.xlu1 %1189 }
 0x278   : > { %v1445_v21 = vadd.f32 1.0, %v1429_v6  ;;  %v1395_v12 = vmin.f32 %v1190_v62, %v3341_v40  ;;  %v3545_v47 = vmul.f32 %v1459_v53, %v1371_v27  ;;  %v1379_v42 = vmax.f32 %v1363_v28, 0.0 }
 0x279   : > { %v1504_v16 = vsub.f32 %v1488_v15, %v1468_v0  ;;  %v1556_v53 = vadd.s32 24, %v4015_v44 }
 0x27a   : > { %v1461_v4 = vmax.f32 %v1445_v21, 0.0  ;;  %v1431_v49 = vsub.f32 %v1395_v12, %v1415_v14  ;;  %v3593_v12 = vadd.s32 48, %v4015_v44 }
 0x27b   : > { %v1520_v3 = vmul.f32 0.7, %v1504_v16  ;;  %v1200_v23 = vpop.permute.xlu1 %1199  ;;  %vm1574_vm9 = vcmp.lt.s32.totalorder %v3539_v48, %v1556_v53  ;;  %vm1655_vm10 = vcmp.lt.s32.totalorder %v1556_v53, %v3539_v48 }
 0x27c   : > { %v1447_v31 = vadd.f32 1.0, %v1431_v49  ;;  %v1397_v41 = vmin.f32 %v1200_v23, %v3341_v40  ;;  %v3554_v60 = vmul.f32 %v1461_v4, %v1373_v33  ;;  %v3604_v33 = vadd.s32 56, %v4015_v44 }
 0x27d   : > { %vm1536_vm2 = vcmp.gt.f32.partialorder %v1468_v0, %v1520_v3  ;;  %v3580_v0 = vadd.s32 40, %v4015_v44 }
 0x27e   : > { %vm1587_vm3 = vmand %vm1536_vm2, %vm1571_vm0  ;;  %v1463_v7 = vmax.f32 %v1447_v31, 0.0  ;;  %v1433_v45 = vsub.f32 %v1397_v41, %v1417_v20  ;;  %v3615_v20 = vadd.s32 64, %v4015_v44 }
 0x27f   : > { %v1620_v1 = vsel %vm1587_vm3, 1.0, %v2378_v52  ;;  %vm1668_vm4 = vmand %vm1536_vm2, %vm1652_vm1  ;;  %v1210_v46 = vpop.permute.xlu1 %1209  ;;  %vm1576_vm15 = vcmp.lt.s32.totalorder %v3539_v48, %v3580_v0  ;;  %vm1657_vm1 = vcmp.lt.s32.totalorder %v3580_v0, %v3539_v48 }
 0x280   : > { %1636 = vst [vmem:[#allocation2 + $0x30] sm:$0xff] %v1620_v1  ;;  %v1716_v50 = vsel %vm1668_vm4, 1.0, %v2378_v52  ;;  %v1449_v29 = vadd.f32 1.0, %v1433_v45  ;;  %v1399_v63 = vmin.f32 %v1210_v46, %v3341_v40  ;;  %v3564_v58 = vmul.f32 %v1463_v7, %v1375_v35 }
 0x281   : > { %1732 = vst [vmem:[#allocation3 + $0x28] sm:$0xff] %v1716_v50  ;;  %v1555_v40 = vadd.s32 16, %v4015_v44  ;;  %vm1577_vm4 = vcmp.lt.s32.totalorder %v3539_v48, %v3593_v12  ;;  %v3644_v46 = vadd.s32 72, %v4015_v44 }
 0x282   : > { %v1465_v30 = vmax.f32 %v1449_v29, 0.0  ;;  %v1435_v57 = vsub.f32 %v1399_v63, %v1419_v54 }
 0x283   : > { %vm1573_vm7 = vcmp.lt.s32.totalorder %v3539_v48, %v1555_v40  ;;  %vm1654_vm8 = vcmp.lt.s32.totalorder %v1555_v40, %v3539_v48 }
 0x284   : > { %v1451_v61 = vadd.f32 1.0, %v1435_v57  ;;  %v3566_v18 = vmul.f32 %v1465_v30, %v1377_v13 }
 0x286   : > { %v1467_v32 = vmax.f32 %v1451_v61, 0.0 }
 0x288   : > { %v3568_v59 = vmul.f32 %v1467_v32, %v1379_v42 }
 0x2b4   : > { %v1220_v27 = vpop.permute.xlu1 %1219 }
 0x2b5   : > { %v1489_v37 = vadd.f32 %v3531_v10, %v1220_v27 }
 0x2b7   : > { %v1505_v11 = vsub.f32 %v1489_v37, %v3376_v25 }
 0x2b8   : > { %v1225_v6 = vpop.permute.xlu1 %1224  ;;  %v1230_v8 = vpop.permute.xlu0 %1229 }
 0x2b9   : > { %v1521_v15 = vmul.f32 0.7, %v1505_v11  ;;  %v1490_v62 = vadd.f32 %v3531_v10, %v1225_v6  ;;  %v1491_v43 = vadd.f32 %v3531_v10, %v1230_v8  ;;  %v3697_v11 = vadd.s32 88, %v4015_v44 }
 0x2bb   : > { %vm1537_vm11 = vcmp.gt.f32.partialorder %v3376_v25, %v1521_v15  ;;  %v1506_v14 = vsub.f32 %v1490_v62, %v3517_v22  ;;  %v1507_v21 = vsub.f32 %v1491_v43, %v3527_v24  ;;  %v3714_v43 = vadd.s32 96, %v4015_v44 }
 0x2bc   : > { %vm1588_vm12 = vmand %vm1537_vm11, %vm1572_vm5  ;;  %v1235_v16 = vpop.permute.xlu1 %1234  ;;  %v1240_v25 = vpop.permute.xlu0 %1239 }
 0x2bd   : > { %v1621_v56 = vsel %vm1588_vm12, 1.0, %v2378_v52  ;;  %vm1669_vm0 = vmand %vm1537_vm11, %vm1653_vm6  ;;  %v1522_v4 = vmul.f32 0.7, %v1506_v14  ;;  %v1523_v49 = vmul.f32 0.7, %v1507_v21  ;;  %v1492_v3 = vadd.f32 %v3531_v10, %v1235_v16 }
 0x2be   : > { %1637 = vst [vmem:[#allocation2] sm:$0xff] %v1621_v56  ;;  %v1717_v23 = vsel %vm1669_vm0, 1.0, %v2378_v52  ;;  %v1493_v34 = vadd.f32 %v3531_v10, %v1240_v25  ;;  %vm1658_vm6 = vcmp.lt.s32.totalorder %v3593_v12, %v3539_v48  ;;  %vm1578_vm11 = vcmp.lt.s32.totalorder %v3539_v48, %v3604_v33 }
 0x2bf   : > { %1733 = vst [vmem:[#allocation3 + $0x68] sm:$0xff] %v1717_v23  ;;  %vm1538_vm2 = vcmp.gt.f32.partialorder %v3517_v22, %v1522_v4  ;;  %vm1539_vm3 = vcmp.gt.f32.partialorder %v3527_v24, %v1523_v49  ;;  %v1508_v31 = vsub.f32 %v1492_v3, %v3394_v26  ;;  %vm1659_vm12 = vcmp.lt.s32.totalorder %v3604_v33, %v3539_v48 }
 0x2c0   : > { %vm1589_vm5 = vmand %vm1538_vm2, %vm1573_vm7  ;;  %v1509_v41 = vsub.f32 %v1493_v34, %v3536_v38  ;;  %v1245_v35 = vpop.permute.xlu1 %1244  ;;  %v1250_v22 = vpop.permute.xlu0 %1249  ;;  %v1566_v3 = vadd.s32 104, %v4015_v44 }
 0x2c1   : > { %v1622_v36 = vsel %vm1589_vm5, 1.0, %v2378_v52  ;;  %vm1670_vm0 = vmand %vm1538_vm2, %vm1654_vm8  ;;  %v1524_v7 = vmul.f32 0.7, %v1508_v31  ;;  %v1494_v45 = vadd.f32 %v3531_v10, %v1245_v35  ;;  %v1495_v17 = vadd.f32 %v3531_v10, %v1250_v22 }
 0x2c2   : > { %1638 = vst [vmem:[#allocation2 + $0x58] sm:$0xff] %v1622_v36  ;;  %v1718_v54 = vsel %vm1670_vm0, 1.0, %v2378_v52  ;;  %vm1590_vm7 = vmand %vm1539_vm3, %vm1574_vm9  ;;  %v1525_v1 = vmul.f32 0.7, %v1509_v41  ;;  %vm1579_vm5 = vcmp.lt.s32.totalorder %v3539_v48, %v3615_v20 }
 0x2c3   : > { %1734 = vst [vmem:[#allocation3 + $0x10] sm:$0xff] %v1718_v54  ;;  %v1623_v50 = vsel %vm1590_vm7, 1.0, %v2378_v52  ;;  %vm1671_vm8 = vmand %vm1539_vm3, %vm1655_vm10  ;;  %vm1540_vm2 = vcmp.gt.f32.partialorder %v3394_v26, %v1524_v7  ;;  %v1510_v29 = vsub.f32 %v1494_v45, %v3407_v19  ;;  %v1511_v63 = vsub.f32 %v1495_v17, %v3545_v47 }
 0x2c4   : > { %1639 = vst [vmem:[#allocation2 + $0x18] sm:$0xff] %v1623_v50  ;;  %v1719_v13 = vsel %vm1671_vm8, 1.0, %v2378_v52  ;;  %vm1591_vm9 = vmand %vm1540_vm2, %vm1575_vm13  ;;  %vm1541_vm0 = vcmp.gt.f32.partialorder %v3536_v38, %v1525_v1  ;;  %vm1660_vm7 = vcmp.lt.s32.totalorder %v3615_v20, %v3539_v48  ;;  %v1255_v24 = vpop.permute.xlu1 %1254  ;;  %v1260_v28 = vpop.permute.xlu0 %1259  ;;  %v3662_v26 = vadd.s32 80, %v4015_v44 }
 0x2c5   : > { %1735 = vst [vmem:[#allocation3 + $0x40] sm:$0xff] %v1719_v13  ;;  %v1624_v30 = vsel %vm1591_vm9, 1.0, %v2378_v52  ;;  %vm1672_vm10 = vmand %vm1540_vm2, %vm1656_vm14  ;;  %v1526_v57 = vmul.f32 0.7, %v1510_v29  ;;  %v1527_v61 = vmul.f32 0.7, %v1511_v63  ;;  %v1496_v42 = vadd.f32 %v3531_v10, %v1255_v24 }
 0x2c6   : > { %1640 = vst [vmem:[#allocation2 + $0x50] sm:$0xff] %v1624_v30  ;;  %v1720_v32 = vsel %vm1672_vm10, 1.0, %v2378_v52  ;;  %vm1592_vm13 = vmand %vm1541_vm0, %vm1576_vm15  ;;  %vm1580_vm3 = vcmp.lt.s32.totalorder %v3539_v48, %v3644_v46  ;;  %vm1661_vm8 = vcmp.lt.s32.totalorder %v3644_v46, %v3539_v48  ;;  %v1497_v39 = vadd.f32 %v3531_v10, %v1260_v28 }
 0x2c7   : > { %1736 = vst [vmem:[#allocation3 + $0x48] sm:$0xff] %v1720_v32  ;;  %v1625_v27 = vsel %vm1592_vm13, 1.0, %v2378_v52  ;;  %vm1673_vm14 = vmand %vm1541_vm0, %vm1657_vm1  ;;  %vm1542_vm2 = vcmp.gt.f32.partialorder %v3407_v19, %v1526_v57  ;;  %vm1543_vm15 = vcmp.gt.f32.partialorder %v3545_v47, %v1527_v61  ;;  %v1512_v37 = vsub.f32 %v1496_v42, %v3411_v55 }
 0x2c8   : > { %1641 = vst [vmem:[#allocation2 + $0x68] sm:$0xff] %v1625_v27  ;;  %v1721_v40 = vsel %vm1673_vm14, 1.0, %v2378_v52  ;;  %vm1593_vm9 = vmand %vm1542_vm2, %vm1577_vm4  ;;  %v1513_v53 = vsub.f32 %v1497_v39, %v3554_v60  ;;  %vm1581_vm10 = vcmp.lt.s32.totalorder %v3539_v48, %v3662_v26  ;;  %v1265_v38 = vpop.permute.xlu1 %1264  ;;  %v1270_v19 = vpop.permute.xlu0 %1269  ;;  %vm1662_vm0 = vcmp.lt.s32.totalorder %v3662_v26, %v3539_v48 }
 0x2c9   : > { %1737 = vst [vmem:[#allocation3 + $0x30] sm:$0xff] %v1721_v40  ;;  %v1626_v6 = vsel %vm1593_vm9, 1.0, %v2378_v52  ;;  %vm1674_vm1 = vmand %vm1542_vm2, %vm1658_vm6  ;;  %v1528_v8 = vmul.f32 0.7, %v1512_v37  ;;  %v1498_v5 = vadd.f32 %v3531_v10, %v1265_v38  ;;  %v1499_v0 = vadd.f32 %v3531_v10, %v1270_v19 }
 0x2ca   : > { %1642 = vst [vmem:[#allocation2 + $0x8] sm:$0xff] %v1626_v6  ;;  %v1722_v15 = vsel %vm1674_vm1, 1.0, %v2378_v52  ;;  %vm1594_vm4 = vmand %vm1543_vm15, %vm1578_vm11  ;;  %v1529_v62 = vmul.f32 0.7, %v1513_v53  ;;  %vm1582_vm2 = vcmp.lt.s32.totalorder %v3539_v48, %v3697_v11  ;;  %vm1583_vm9 = vcmp.lt.s32.totalorder %v3539_v48, %v3714_v43 }
 0x2cb   : > { %1738 = vst [vmem:[#allocation3 + $0x70] sm:$0xff] %v1722_v15  ;;  %v1627_v14 = vsel %vm1594_vm4, 1.0, %v2378_v52  ;;  %vm1675_vm6 = vmand %vm1543_vm15, %vm1659_vm12  ;;  %vm1544_vm13 = vcmp.gt.f32.partialorder %v3411_v55, %v1528_v8  ;;  %v1514_v21 = vsub.f32 %v1498_v5, %v3421_v51  ;;  %v1515_v12 = vsub.f32 %v1499_v0, %v3564_v58 }
 0x2cc   : > { %1643 = vst [vmem:[#allocation2 + $0x48] sm:$0xff] %v1627_v14  ;;  %v1723_v16 = vsel %vm1675_vm6, 1.0, %v2378_v52  ;;  %vm1595_vm11 = vmand %vm1544_vm13, %vm1579_vm5  ;;  %vm1545_vm14 = vcmp.gt.f32.partialorder %v3554_v60, %v1529_v62  ;;  %vm1663_vm12 = vcmp.lt.s32.totalorder %v3697_v11, %v3539_v48  ;;  %v1275_v55 = vpop.permute.xlu1 %1274  ;;  %v1280_v47 = vpop.permute.xlu0 %1279  ;;  %vm1664_vm6 = vcmp.lt.s32.totalorder %v3714_v43, %v3539_v48 }
 0x2cd   : > { %1739 = vst [vmem:[#allocation3 + $0x38] sm:$0xff] %v1723_v16  ;;  %v1628_v25 = vsel %vm1595_vm11, 1.0, %v2378_v52  ;;  %vm1676_vm15 = vmand %vm1544_vm13, %vm1660_vm7  ;;  %v1530_v33 = vmul.f32 0.7, %v1514_v21  ;;  %v1531_v56 = vmul.f32 0.7, %v1515_v12  ;;  %v1500_v4 = vadd.f32 %v3531_v10, %v1275_v55 }
 0x2ce   : > { %1644 = vst [vmem:[#allocation2 + $0x40] sm:$0xff] %v1628_v25  ;;  %v1724_v49 = vsel %vm1676_vm15, 1.0, %v2378_v52  ;;  %vm1596_vm5 = vmand %vm1545_vm14, %vm1580_vm3  ;;  %v1501_v23 = vadd.f32 %v3531_v10, %v1280_v47  ;;  %v1567_v60 = vadd.s32 112, %v4015_v44  ;;  %vm1584_vm13 = vcmp.lt.s32.totalorder %v3539_v48, %v1566_v3 }
 0x2cf   : > { %1740 = vst [vmem:[#allocation3 + $0x20] sm:$0xff] %v1724_v49  ;;  %v1629_v34 = vsel %vm1596_vm5, 1.0, %v2378_v52  ;;  %vm1677_vm7 = vmand %vm1545_vm14, %vm1661_vm8  ;;  %vm1546_vm1 = vcmp.gt.f32.partialorder %v3421_v51, %v1530_v33  ;;  %vm1547_vm3 = vcmp.gt.f32.partialorder %v3564_v58, %v1531_v56  ;;  %v1516_v20 = vsub.f32 %v1500_v4, %v3483_v2 }
 0x2d0   : > { %1645 = vst [vmem:[#allocation2 + $0x20] sm:$0xff] %v1629_v34  ;;  %v1725_v31 = vsel %vm1677_vm7, 1.0, %v2378_v52  ;;  %vm1597_vm4 = vmand %vm1546_vm1, %vm1581_vm10  ;;  %v1517_v41 = vsub.f32 %v1501_v23, %v3566_v18  ;;  %v1285_v35 = vpop.permute.xlu1 %1284  ;;  %v1290_v51 = vpop.permute.xlu0 %1289  ;;  %v1568_v1 = vadd.s32 120, %v4015_v44  ;;  %vm1585_vm5 = vcmp.lt.s32.totalorder %v3539_v48, %v1567_v60 }
 0x2d1   : > { %1741 = vst [vmem:[#allocation3 + $0x78] sm:$0xff] %v1725_v31  ;;  %v1630_v22 = vsel %vm1597_vm4, 1.0, %v2378_v52  ;;  %vm1678_vm8 = vmand %vm1546_vm1, %vm1662_vm0  ;;  %v1532_v36 = vmul.f32 0.7, %v1516_v20  ;;  %v1502_v7 = vadd.f32 %v3531_v10, %v1285_v35  ;;  %v1503_v45 = vadd.f32 %v3531_v10, %v1290_v51 }
 0x2d2   : > { %1646 = vst [vmem:[#allocation2 + $0x10] sm:$0xff] %v1630_v22  ;;  %v1726_v17 = vsel %vm1678_vm8, 1.0, %v2378_v52  ;;  %vm1598_vm10 = vmand %vm1547_vm3, %vm1582_vm2  ;;  %v1533_v54 = vmul.f32 0.7, %v1517_v41  ;;  %vm1665_vm2 = vcmp.lt.s32.totalorder %v1566_v3, %v3539_v48  ;;  %vm1666_vm7 = vcmp.lt.s32.totalorder %v1567_v60, %v3539_v48 }
 0x2d3   : > { %1742 = vst [vmem:[#allocation3 + $0x18] sm:$0xff] %v1726_v17  ;;  %v1631_v46 = vsel %vm1598_vm10, 1.0, %v2378_v52  ;;  %vm1679_vm0 = vmand %vm1547_vm3, %vm1663_vm12  ;;  %vm1548_vm11 = vcmp.gt.f32.partialorder %v3483_v2, %v1532_v36  ;;  %v1518_v10 = vsub.f32 %v1502_v7, %v3488_v9  ;;  %v1519_v50 = vsub.f32 %v1503_v45, %v3568_v59 }
 0x2d4   : > { %1647 = vst [vmem:[#allocation2 + $0x38] sm:$0xff] %v1631_v46  ;;  %v1727_v29 = vsel %vm1679_vm0, 1.0, %v2378_v52  ;;  %vm1599_vm14 = vmand %vm1548_vm11, %vm1583_vm9  ;;  %vm1549_vm15 = vcmp.gt.f32.partialorder %v3566_v18, %v1533_v54  ;;  %vm1586_vm4 = vcmp.lt.s32.totalorder %v3539_v48, %v1568_v1  ;;  %vm1667_vm10 = vcmp.lt.s32.totalorder %v1568_v1, %v3539_v48 }
 0x2d5   : > { %1743 = vst [vmem:[#allocation3 + $0x58] sm:$0xff] %v1727_v29  ;;  %v1632_v44 = vsel %vm1599_vm14, 1.0, %v2378_v52  ;;  %vm1680_vm12 = vmand %vm1548_vm11, %vm1664_vm6  ;;  %v1534_v2 = vmul.f32 0.7, %v1518_v10  ;;  %v1535_v58 = vmul.f32 0.7, %v1519_v50 }
 0x2d6   : > { %1648 = vst [vmem:[#allocation2 + $0x60] sm:$0xff] %v1632_v44  ;;  %v1728_v63 = vsel %vm1680_vm12, 1.0, %v2378_v52  ;;  %vm1600_vm9 = vmand %vm1549_vm15, %vm1584_vm13  ;;  %v3817_v26 = vmov 1.0  }
 0x2d7   : > { %1744 = vst [vmem:[#allocation3] sm:$0xff] %v1728_v63  ;;  %v1633_v18 = vsel %vm1600_vm9, 1.0, %v2378_v52  ;;  %vm1681_vm1 = vmand %vm1549_vm15, %vm1665_vm2  ;;  %vm1550_vm3 = vcmp.gt.f32.partialorder %v3488_v9, %v1534_v2  ;;  %vm1551_vm6 = vcmp.gt.f32.partialorder %v3568_v59, %v1535_v58 }
 0x2d8   : > { %1649 = vst [vmem:[#allocation2 + $0x70] sm:$0xff] %v1633_v18  ;;  %v1729_v13 = vsel %vm1681_vm1, 1.0, %v2378_v52  ;;  %vm1601_vm8 = vmand %vm1550_vm3, %vm1585_vm5 }
 0x2d9   : > { %1745 = vst [vmem:[#allocation3 + $0x8] sm:$0xff] %v1729_v13  ;;  %v1634_v24 = vsel %vm1601_vm8, 1.0, %v2378_v52  ;;  %vm1682_vm13 = vmand %vm1550_vm3, %vm1666_vm7 }
 0x2da   : > { %1650 = vst [vmem:[#allocation2 + $0x78] sm:$0xff] %v1634_v24  ;;  %v1730_v9 = vsel %vm1682_vm13, 1.0, %v2378_v52  ;;  %vm1602_vm0 = vmand %vm1551_vm6, %vm1586_vm4 }
 0x2db   : > { %1746 = vst [vmem:[#allocation3 + $0x60] sm:$0xff] %v1730_v9  ;;  %v1635_v59 = vsel %vm1602_vm0, 1.0, %v2378_v52  ;;  %vm1683_vm11 = vmand %vm1551_vm6, %vm1667_vm10 }
 0x2dc   : > { %1651 = vst [vmem:[#allocation2 + $0x28] sm:$0xff] %v1635_v59  ;;  %v1731_v28 = vsel %vm1683_vm11, 1.0, %v2378_v52 }
 0x2dd   : > { %1747 = vst [vmem:[#allocation3 + $0x50] sm:$0xff] %v1731_v28 }
 0x2de LB: >> { %v1788_v48 = vld [vmem:[#allocation2 + $0x30] sm:$0xff]  ;;  %v1790_v30 = vld [vmem:[#allocation2 + $0x58] sm:$0xff]  ;;  %v1789_v57 = vld [vmem:[#allocation2] sm:$0xff]  ;;  %v2379_v34 = vmov 1.0   ;;  %v2369_v26 = vphi %v3817_v26, %v4018_v26  }
 0x2df   : >> { %v1791_v61 = vld [vmem:[#allocation2 + $0x18] sm:$0xff]  ;;  %v1804_v42 = vmul.f32 %v2369_v26, %v1788_v48  ;;  %v1806_v32 = vmul.f32 %v2369_v26, %v1790_v30  ;;  %v1805_v52 = vmul.f32 %v2369_v26, %v1789_v57  ;;  %v1792_v27 = vld [vmem:[#allocation2 + $0x50] sm:$0xff]  ;;  %v1793_v37 = vld [vmem:[#allocation2 + $0x68] sm:$0xff] }
 0x2e0   : >> { %v1807_v39 = vmul.f32 %v2369_v26, %v1791_v61  ;;  %v1808_v40 = vmul.f32 %v2369_v26, %v1792_v27  ;;  %v1809_v53 = vmul.f32 %v2369_v26, %v1793_v37  ;;  %v1794_v38 = vld [vmem:[#allocation2 + $0x8] sm:$0xff]  ;;  %v1796_v8 = vld [vmem:[#allocation2 + $0x40] sm:$0xff]  ;;  %v1798_v62 = vld [vmem:[#allocation2 + $0x10] sm:$0xff] }
 0x2e1   : >> { %1820 = vadd.xlane.f32.xlu0 %v1804_v42  ;;  %1824 = vadd.xlane.f32.xlu1 %v1806_v32  ;;  %v1795_v11 = vld [vmem:[#allocation2 + $0x48] sm:$0xff]  ;;  %v1810_v19 = vmul.f32 %v2369_v26, %v1794_v38  ;;  %v1797_v5 = vld [vmem:[#allocation2 + $0x20] sm:$0xff]  ;;  %v1812_v0 = vmul.f32 %v2369_v26, %v1796_v8  ;;  %v1799_v43 = vld [vmem:[#allocation2 + $0x38] sm:$0xff]  ;;  %v1814_v14 = vmul.f32 %v2369_v26, %v1798_v62 }
 0x2e2   : >> { %v1811_v6 = vmul.f32 %v2369_v26, %v1795_v11  ;;  %v1813_v15 = vmul.f32 %v2369_v26, %v1797_v5  ;;  %v1815_v21 = vmul.f32 %v2369_v26, %v1799_v43  ;;  %v1800_v12 = vld [vmem:[#allocation2 + $0x60] sm:$0xff]  ;;  %v1801_v16 = vld [vmem:[#allocation2 + $0x70] sm:$0xff]  ;;  %v1802_v25 = vld [vmem:[#allocation2 + $0x78] sm:$0xff] }
 0x2e3   : >> { %v1816_v55 = vmul.f32 %v2369_v26, %v1800_v12  ;;  %v1817_v47 = vmul.f32 %v2369_v26, %v1801_v16  ;;  %v1803_v33 = vld [vmem:[#allocation2 + $0x28] sm:$0xff]  ;;  %v1818_v56 = vmul.f32 %v2369_v26, %v1802_v25  ;;  %v1902_v35 = vld [vmem:[#allocation3 + $0x10] sm:$0xff]  ;;  %v1903_v36 = vld [vmem:[#allocation3 + $0x40] sm:$0xff] }
 0x2e4   : >> { %v1819_v4 = vmul.f32 %v2369_v26, %v1803_v33  ;;  %v1900_v23 = vld [vmem:[#allocation3 + $0x28] sm:$0xff]  ;;  %v1905_v2 = vld [vmem:[#allocation3 + $0x30] sm:$0xff]  ;;  %v1907_v30 = vld [vmem:[#allocation3 + $0x38] sm:$0xff] }
 0x2e5   : >> { %1822 = vadd.xlane.f32.xlu0 %v1805_v52  ;;  %1826 = vadd.xlane.f32.xlu1 %v1807_v39  ;;  %v1901_v31 = vld [vmem:[#allocation3 + $0x68] sm:$0xff]  ;;  %v1906_v13 = vld [vmem:[#allocation3 + $0x70] sm:$0xff]  ;;  %v1908_v32 = vld [vmem:[#allocation3 + $0x20] sm:$0xff] }
 0x2e6   : >> { %v1904_v1 = vld [vmem:[#allocation3 + $0x48] sm:$0xff]  ;;  %v1911_v43 = vld [vmem:[#allocation3 + $0x58] sm:$0xff]  ;;  %v1912_v16 = vld [vmem:[#allocation3] sm:$0xff] }
 0x2e9   : >> { %1828 = vadd.xlane.f32.xlu0 %v1808_v40  ;;  %1830 = vadd.xlane.f32.xlu1 %v1809_v53  ;;  %v1909_v53 = vld [vmem:[#allocation3 + $0x78] sm:$0xff] }
 0x2ed   : >> { %1832 = vadd.xlane.f32.xlu0 %v1810_v19  ;;  %1834 = vadd.xlane.f32.xlu1 %v1811_v6  ;;  %v1910_v6 = vld [vmem:[#allocation3 + $0x18] sm:$0xff] }
 0x2f1   : >> { %1836 = vadd.xlane.f32.xlu0 %v1812_v0  ;;  %1838 = vadd.xlane.f32.xlu1 %v1813_v15 }
 0x2f5   : >> { %1840 = vadd.xlane.f32.xlu0 %v1814_v14  ;;  %1842 = vadd.xlane.f32.xlu1 %v1815_v21 }
 0x2f9   : >> { %1844 = vadd.xlane.f32.xlu0 %v1816_v55  ;;  %1846 = vadd.xlane.f32.xlu1 %v1817_v47 }
 0x2fd   : >> { %1848 = vadd.xlane.f32.xlu0 %v1818_v56  ;;  %1850 = vadd.xlane.f32.xlu1 %v1819_v4  ;;  %v1913_v4 = vld [vmem:[#allocation3 + $0x8] sm:$0xff] }
 0x36a   : >> { %v1821_v49 = vpop.xlane.xlu0 %1820  ;;  %v1825_v3 = vpop.xlane.xlu1 %1824 }
 0x36b   : >> { %vm1852_vm14 = vcmp.gt.f32.partialorder %v1821_v49, 0.5  ;;  %vm1854_vm2 = vcmp.gt.f32.partialorder %v1825_v3, 0.5 }
 0x36c   : >> { %v1868_v20 = vsel %vm1852_vm14, 0.0, %v2379_v34  ;;  %v1870_v51 = vsel %vm1854_vm2, 0.0, %v2379_v34  ;;  %vm1958_vm2 = vcmask 1040384  }
 0x36d   : >> { %v1916_v45 = vmul.f32 %v1900_v23, %v1868_v20  ;;  %v1918_v54 = vmul.f32 %v1902_v35, %v1870_v51  ;;  %v1914_v20 = vld [vmem:[#allocation3 + $0x60] sm:$0xff] }
 0x36e   : >> { %v1823_v41 = vpop.xlane.xlu0 %1822  ;;  %v1827_v60 = vpop.xlane.xlu1 %1826 }
 0x36f   : >> { %vm1853_vm15 = vcmp.gt.f32.partialorder %v1823_v41, 0.5  ;;  %vm1855_vm12 = vcmp.gt.f32.partialorder %v1827_v60, 0.5 }
 0x370   : >> { %v1869_v22 = vsel %vm1853_vm15, 0.0, %v2379_v34  ;;  %v1871_v7 = vsel %vm1855_vm12, 0.0, %v2379_v34 }
 0x371   : >> { %v1917_v17 = vmul.f32 %v1901_v31, %v1869_v22  ;;  %v1919_v29 = vmul.f32 %v1903_v36, %v1871_v7  ;;  %v1915_v22 = vld [vmem:[#allocation3 + $0x50] sm:$0xff] }
 0x372   : >> { %v1829_v46 = vpop.xlane.xlu0 %1828  ;;  %v1831_v10 = vpop.xlane.xlu1 %1830 }
 0x373   : >> { %v1932_v50 = vadd.f32 %v1917_v17, %v1916_v45  ;;  %vm1856_vm5 = vcmp.gt.f32.partialorder %v1829_v46, 0.5  ;;  %vm1857_vm9 = vcmp.gt.f32.partialorder %v1831_v10, 0.5 }
 0x374   : >> { %v1872_v44 = vsel %vm1856_vm5, 0.0, %v2379_v34  ;;  %v1873_v58 = vsel %vm1857_vm9, 0.0, %v2379_v34 }
 0x375   : >> { %v1933_v63 = vadd.f32 %v1932_v50, %v1918_v54  ;;  %v1920_v18 = vmul.f32 %v1904_v1, %v1872_v44  ;;  %v1921_v28 = vmul.f32 %v1905_v2, %v1873_v58 }
 0x376   : >> { %v1833_v24 = vpop.xlane.xlu0 %1832  ;;  %v1835_v9 = vpop.xlane.xlu1 %1834 }
 0x377   : >> { %v1934_v59 = vadd.f32 %v1933_v63, %v1919_v29  ;;  %vm1858_vm7 = vcmp.gt.f32.partialorder %v1833_v24, 0.5  ;;  %vm1859_vm1 = vcmp.gt.f32.partialorder %v1835_v9, 0.5 }
 0x378   : >> { %v1874_v48 = vsel %vm1858_vm7, 0.0, %v2379_v34  ;;  %v1875_v57 = vsel %vm1859_vm1, 0.0, %v2379_v34 }
 0x379   : >> { %v1935_v61 = vadd.f32 %v1934_v59, %v1920_v18  ;;  %v1922_v42 = vmul.f32 %v1906_v13, %v1874_v48  ;;  %v1923_v37 = vmul.f32 %v1907_v30, %v1875_v57 }
 0x37a   : >> { %v1837_v52 = vpop.xlane.xlu0 %1836  ;;  %v1839_v39 = vpop.xlane.xlu1 %1838 }
 0x37b   : >> { %v1936_v27 = vadd.f32 %v1935_v61, %v1921_v28  ;;  %vm1860_vm3 = vcmp.gt.f32.partialorder %v1837_v52, 0.5  ;;  %vm1861_vm4 = vcmp.gt.f32.partialorder %v1839_v39, 0.5 }
 0x37c   : >> { %v1876_v40 = vsel %vm1860_vm3, 0.0, %v2379_v34  ;;  %v1877_v38 = vsel %vm1861_vm4, 0.0, %v2379_v34 }
 0x37d   : >> { %v1937_v11 = vadd.f32 %v1936_v27, %v1922_v42  ;;  %v1924_v19 = vmul.f32 %v1908_v32, %v1876_v40  ;;  %v1925_v15 = vmul.f32 %v1909_v53, %v1877_v38 }
 0x37e   : >> { %v1841_v8 = vpop.xlane.xlu0 %1840  ;;  %v1843_v5 = vpop.xlane.xlu1 %1842 }
 0x37f   : >> { %v1938_v0 = vadd.f32 %v1937_v11, %v1923_v37  ;;  %vm1862_vm6 = vcmp.gt.f32.partialorder %v1841_v8, 0.5  ;;  %vm1863_vm8 = vcmp.gt.f32.partialorder %v1843_v5, 0.5 }
 0x380   : >> { %v1878_v62 = vsel %vm1862_vm6, 0.0, %v2379_v34  ;;  %v1879_v14 = vsel %vm1863_vm8, 0.0, %v2379_v34 }
 0x381   : >> { %v1939_v21 = vadd.f32 %v1938_v0, %v1924_v19  ;;  %v1926_v12 = vmul.f32 %v1910_v6, %v1878_v62  ;;  %v1927_v33 = vmul.f32 %v1911_v43, %v1879_v14 }
 0x382   : >> { %v1845_v55 = vpop.xlane.xlu0 %1844  ;;  %v1847_v47 = vpop.xlane.xlu1 %1846 }
 0x383   : >> { %v1940_v25 = vadd.f32 %v1939_v21, %v1925_v15  ;;  %vm1864_vm10 = vcmp.gt.f32.partialorder %v1845_v55, 0.5  ;;  %vm1865_vm13 = vcmp.gt.f32.partialorder %v1847_v47, 0.5 }
 0x384   : >> { %v1880_v56 = vsel %vm1864_vm10, 0.0, %v2379_v34  ;;  %v1881_v49 = vsel %vm1865_vm13, 0.0, %v2379_v34 }
 0x385   : >> { %v1941_v3 = vadd.f32 %v1940_v25, %v1926_v12  ;;  %v1928_v23 = vmul.f32 %v1912_v16, %v1880_v56  ;;  %v1929_v35 = vmul.f32 %v1913_v4, %v1881_v49 }
 0x386   : >> { %v1849_v31 = vpop.xlane.xlu0 %1848  ;;  %v1851_v41 = vpop.xlane.xlu1 %1850 }
 0x387   : >> { %v1942_v60 = vadd.f32 %v1941_v3, %v1927_v33  ;;  %vm1866_vm0 = vcmp.gt.f32.partialorder %v1849_v31, 0.5  ;;  %vm1867_vm11 = vcmp.gt.f32.partialorder %v1851_v41, 0.5 }
 0x388   : >> { %v1882_v51 = vsel %vm1866_vm0, 0.0, %v2379_v34  ;;  %v1883_v36 = vsel %vm1867_vm11, 0.0, %v2379_v34 }
 0x389   : >> { %v1943_v7 = vadd.f32 %v1942_v60, %v1928_v23  ;;  %v1930_v45 = vmul.f32 %v1914_v20, %v1882_v51  ;;  %v1931_v54 = vmul.f32 %v1915_v22, %v1883_v36 }
 0x38b   : >> { %v1944_v17 = vadd.f32 %v1943_v7, %v1929_v35 }
 0x38d   : >> { %v1945_v1 = vadd.f32 %v1944_v17, %v1930_v45 }
 0x38f   : >> { %v1946_v46 = vadd.f32 %v1945_v1, %v1931_v54 }
 0x391   : >> { %v1947_v10 = vrot.slane %v1946_v46, 4 }
 0x393   : >> { %v1948_v50 = vadd.f32 %v1947_v10, %v1946_v46 }
 0x395   : >> { %v1949_v29 = vrot.slane %v1948_v50, 2 }
 0x397   : >> { %v1950_v44 = vadd.f32 %v1949_v29, %v1948_v50 }
 0x399   : >> { %v1951_v2 = vrot.slane %v1950_v44, 1 }
 0x39b   : >> { %v1952_v58 = vadd.f32 %v1951_v2, %v1950_v44 }
 0x39d   : >> { %vm1953_vm14 = vcmp.gt.f32.partialorder %v1952_v58, 0.5 }
 0x39e   : >> { %v1954_v63 = vsel %vm1953_vm14, 0.0, %v2379_v34  }
 0x39f   : >> { %v1956_v18 = vsub.f32 %v1954_v63, %v2369_v26  ;;  %v4018_v26 = vmov %v1954_v63 }
 0x3a1   : >> { %v1957_v13 = vand.u32 2147483647, %v1956_v18 }
 0x3a3   : >> { %v1959_v24 = vsel %vm1958_vm2, %v1957_v13, 0.0 }
 0x3a4   : >> { %1960 = vadd.xlane.f32.xlu0 %v1959_v24 }
 0x42d   : >> { %v1961_v9 = vpop.xlane.xlu0 %1960 }
 0x42e   : >> { %v1962_v59 = vrot.slane %v1961_v9, 4 }
 0x430   : >> { %v1963_v28 = vadd.f32 %v1962_v59, %v1961_v9 }
 0x432   : >> { %v1964_v48 = vrot.slane %v1963_v28, 2 }
 0x434   : >> { %v1965_v30 = vadd.f32 %v1964_v48, %v1963_v28 }
 0x436   : >> { %v1966_v57 = vrot.slane %v1965_v30, 1 }
 0x438   : >> { %v1967_v61 = vadd.f32 %v1966_v57, %v1965_v30 }
 0x43a   : >> { %2136 = vpush %v1967_v61 }
 0x46b   : >> { %s2137_s11 = spop %2136 }
 0x46c   : >> { %p1969_p9 = scmp.gt.f32.partialorder %s2137_s11, 0.0 }
 0x46d   : > { %s2131_s12 = sshll.u32 (!%p1969_p9), %s2428_s19, 6  ;;  %s1989_s22 = sshll.u32 (!%p1969_p9), %s3043_s9, 4  ;;  %s1990_s22 = int_to_ptr.vmem [resolvable:$true] %s1989_s22 }
 0x46e   : > { %1787 = sbr.rel (%p1969_p9) target bundleno = 734 (0x2de), region = 99  ;;  %s1987_s20 = scalar_lea.hbm (!%p1969_p9), %s3917_s3, %s2131_s12 }
 0x46f   : > { %s1972_s23 = scalar_lea.sflag (!%p1969_p9), [#allocation5], %s2705_s28  ;;  %s2267_s27 = scalar_lea.vmem (!%p1969_p9), %s1990_s22, 64 }
 0x470   : > { %p2268_p10 = scmp.ne.s32.totalorder (!%p1969_p9), %s1990_s22, %s2267_s27  ;;  %s2380_s29 = smov (!%p1969_p9), [#allocation7]  }
 0x471   : > { %s2271_s30 = sshll.u32 (!%p1969_p9), %s2380_s29, 4  ;;  %s2272_s30 = int_to_ptr.vmem [resolvable:$false] %s2271_s30 }
 0x472   : > { %p2269_p12 = pnand (!%p1969_p9), %p2268_p10, %p2445_p5  ;;  %s2273_s5 = scalar_lea.vmem (!%p1969_p9), %s2272_s30, 128 }
 0x473   : > { %1970 = vst [vmem:[%s227_s10] sm:$0x1] %v1954_v63  ;;  %p2274_p0 = scmp.lt.s32.totalorder %s1990_s22, %s2272_s30  ;;  %p2275_p1 = scmp.lt.s32.totalorder %s2273_s5, %s2267_s27 }
 0x474   : > { %p2270_p13 = pneg %p2269_p12 }
 0x475   : > { %p2276_p2 = por %p2275_p1, %p2274_p0 }
 0x477   : > { %p2277_p3 = pnand %p2276_p2, %p2270_p13 }
 0x479   : > { %2280 = shalt.err (!%p2277_p3)
}
 0x47a   : > { %s2281_s6 = scalar_lea.hbm %s1987_s20, 64  ;;  %s2285_s9 = scalar_lea.hbm %s3917_s3, 128 }
 0x47b   : > { %p2282_p4 = scmp.ne.s32.totalorder %s1987_s20, %s2281_s6  ;;  %p2286_p11 = scmp.lt.s32.totalorder %s1987_s20, %s3917_s3 }
 0x47c   : > { %p2287_p9 = scmp.lt.s32.totalorder %s2285_s9, %s2281_s6 }
 0x47d   : > { %p2283_p7 = pnand %p2282_p4, %p2445_p5 }
 0x47e   : > { %p2288_p10 = por %p2287_p9, %p2286_p11 }
 0x47f   : > { %p2284_p8 = pneg %p2283_p7 }
 0x481   : > { %p2289_p12 = pnand %p2288_p10, %p2284_p8 }
 0x483   : > { %2292 = shalt.err (!%p2289_p12)
}
 0x484   : > { %2142 = dma.vmem_to_hbm [thread:$0]  (%p2445_p5), %s1990_s22, 64, %s1987_s20, %s1972_s23  }
 0x485   : > { %s2132_s13 = sshll.u32 %s2428_s19, 4  ;;  %s2002_s14 = sshll.u32 %s227_s10, 4  ;;  %s2003_s14 = int_to_ptr.vmem [resolvable:$true] %s2002_s14 }
 0x486   : > { %s2000_s30 = scalar_lea.hbm %s3918_s4, %s2132_s13  ;;  %s1977_s5 = scalar_lea.sflag [#allocation9], %s2705_s28 }
 0x487   : > { %s2293_s6 = scalar_lea.vmem %s2003_s14, 16  ;;  %s2381_s7 = smov [#allocation8]  }
 0x488   : > { %p2294_p13 = scmp.ne.s32.totalorder %s2003_s14, %s2293_s6  ;;  %s2297_s8 = sshll.u32 %s2381_s7, 4  ;;  %s2298_s8 = int_to_ptr.vmem [resolvable:$false] %s2297_s8 }
 0x489   : > { %s2299_s9 = scalar_lea.vmem %s2298_s8, 32  ;;  %p2300_p2 = scmp.lt.s32.totalorder %s2003_s14, %s2298_s8 }
 0x48a   : > { %p2295_p0 = pnand %p2294_p13, %p2445_p5  ;;  %p2301_p3 = scmp.lt.s32.totalorder %s2299_s9, %s2293_s6 }
 0x48c   : > { %p2296_p1 = pneg %p2295_p0  ;;  %p2302_p4 = por %p2301_p3, %p2300_p2 }
 0x48e   : > { %p2303_p7 = pnand %p2302_p4, %p2296_p1 }
 0x490   : > { %2306 = shalt.err (!%p2303_p7)
}
 0x491   : > { %s2307_s19 = scalar_lea.hbm %s2000_s30, 16  ;;  %s2311_s20 = scalar_lea.hbm %s3918_s4, 32 }
 0x492   : > { %p2308_p8 = scmp.ne.s32.totalorder %s2000_s30, %s2307_s19  ;;  %p2312_p10 = scmp.lt.s32.totalorder %s2000_s30, %s3918_s4 }
 0x493   : > { %p2313_p12 = scmp.lt.s32.totalorder %s2311_s20, %s2307_s19 }
 0x494   : > { %p2309_p11 = pnand %p2308_p8, %p2445_p5 }
 0x495   : > { %p2314_p13 = por %p2313_p12, %p2312_p10 }
 0x496   : > { %p2310_p9 = pneg %p2309_p11 }
 0x498   : > { %p2315_p0 = pnand %p2314_p13, %p2310_p9 }
 0x49a   : > { %2318 = shalt.err (!%p2315_p0)
}
 0x49b   : > { %2143 = dma.vmem_to_hbm [thread:$0]  (%p2445_p5), %s2003_s14, 16, %s2000_s30, %s1977_s5  }
 0x49c PF: > { %p2159_p1 = scmp.ge.s32.totalorder %s2365_s18, 2  ;;  %s2014_s11 = sand.u32 1, %s2353_s15  }
 0x49d   : > { %s2015_s12 = scalar_lea.sflag [#allocation5], %s2014_s11 }
 0x49e   : > { %p2151_p2 = pnand %p2159_p1, %p2449_p6 }
 0x4a0   : > { %p2152_p3 = pneg %p2151_p2 }
 0x4a2   : > { %2344 = dma.done.wait (%p2152_p3), %s2015_s12, 64  }
 0x4a3   : > { %2346 = vsyncadd (%p2152_p3), %s2015_s12, 4294967232  ;;  %s2024_s13 = scalar_lea.sflag [#allocation9], %s2014_s11 }
 0x4a4   : > { %2348 = dma.done.wait (%p2152_p3), %s2024_s13, 16  }
 0x4a5   : > { %2350 = vsyncadd (%p2152_p3), %s2024_s13, 4294967280  ;;  %p19_p5 = scmp.ge.s32.totalorder %s2432_s21, 4   ;;  %s4019_s15 = smov %s2357_s16 }
 0x4a6   : > { %s4020_s16 = smov %s2361_s17  ;;  %s4021_s17 = smov %s2443_s24 }
 0x4a7   : > { %s4022_s18 = smov %s2432_s21  ;;  %21 = sbr.rel (!%p19_p5) target bundleno = 6 (0x6), region = 110 }
 0x4ac   :  { %2028 = vsyncpa [#allocation5], 1 }
 0x4ad   :  { %2030 = vsyncpa [#allocation5 + $0x1], 1 }
 0x4ae   :  { %2031 = vsyncpa [#allocation9], 1 }
 0x4af   :  { %2033 = vsyncpa [#allocation9 + $0x1], 1 }
 0x4b0   :  { %2034 = vsyncpa [#allocation6], 1 }
 0x4b1   :  { %2036 = vsyncpa [#allocation6 + $0x1], 1 }

</bundles_post_ra>
